<compile_context>
chip_gen: v6e
topology: v6e:2x2x1
jax: 0.10.0
libtpu: 0.0.40
codegen_flags: <defaults>
</compile_context>

<pallas_src>
import functools
import math

import jax
import jax.numpy as jnp
from jax.experimental import pallas as pl
from jax.experimental.pallas import tpu as pltpu


def _basic_block_kernel(H, x_ref, wb1_ref, b1_ref, wb2_ref, b2_ref, o_ref):
    """One block of rows = nb*H packed image rows per grid step.

    x_ref  : (rows, WCp)      lane-dense packed activations
    wb*_ref: (3*WCp, WCp)     banded conv weights, dy slabs stacked along K,
                              bf16, BN scale folded into output columns
    b*_ref : (1, WCp)         folded BN shift (channel-tiled, f32)
    o_ref  : (rows, WCp)      output
    """
    M = x_ref.shape[0]
    x = x_ref[...].astype(jnp.float32)

    # Height-direction halo masks (image-local row index), hoisted once and
    # shared by both convs.
    h = jax.lax.broadcasted_iota(jnp.int32, (M, 1), 0) % H
    has_up = h != 0          # row h-1 exists inside the same image
    has_dn = h != (H - 1)    # row h+1 exists inside the same image

    def conv3x3(a, wb_ref):
        # Height shifts via XLU roll (overlaps with MXU); width shifts/padding
        # live in the banded weights.  Lane-concatenate the three taps and do a
        # single K=3*WCp bf16 MXU dot with f32 accumulation.
        up = jnp.where(has_up, pltpu.roll(a, 1, 0), 0.0)       # a[row-1]
        dn = jnp.where(has_dn, pltpu.roll(a, M - 1, 0), 0.0)   # a[row+1]
        cat = jnp.concatenate([up, a, dn], axis=-1).astype(jnp.bfloat16)
        return jnp.dot(cat, wb_ref[...], preferred_element_type=jnp.float32)

    # BN scale is folded into wb*; only bias + ReLU remain here (f32).
    out1 = jnp.maximum(conv3x3(x, wb1_ref) + b1_ref[...], 0.0)
    out2 = conv3x3(out1, wb2_ref) + b2_ref[...]
    o_ref[...] = jnp.maximum(out2 + x, 0.0).astype(o_ref.dtype)


def _banded_weights(w_hwio, scale, W, WCp):
    """Fold dx taps + channel mixing + width zero-padding + BN scale of a 3x3
    conv into one banded (WCp, WCp) matrix per kernel row dy, stacked along the
    contraction axis -> (3*WCp, WCp), cast to bf16 for the MXU."""
    kh, kw, cin, cout = w_hwio.shape
    ws = w_hwio.astype(jnp.float32) * scale.astype(jnp.float32)[None, None, None, :]
    wb = jnp.zeros((kh, WCp, WCp), jnp.float32)
    for w_out in range(W):
        for dx in range(kw):
            w_in = w_out + dx - 1
            if 0 <= w_in < W:
                wb = wb.at[:, w_in * cin:(w_in + 1) * cin,
                           w_out * cout:(w_out + 1) * cout].set(ws[:, dx])
    return wb.reshape(kh * WCp, WCp).astype(jnp.bfloat16)


def _choose_batch_block(N, H, WCp):
    """Pick images-per-step (nb) and padded batch size from a VMEM budget."""
    # nb must be a multiple of m so rows = nb*H is a multiple of 8 (sublanes).
    m = 8 // math.gcd(H, 8)
    # Budget sized for the smallest generation (v7x: 64 MiB physical VMEM).
    budget = 40 * 1024 * 1024
    weight_bytes = 2 * 2 * (3 * WCp * WCp) * 2     # 2 convs, worst-case 2-buf, bf16
    per_row = WCp * 64                             # in/out double-buffers + live temps
    rows_cap = max(8 * H, (budget - weight_bytes) // per_row)
    rows_cap = min(rows_cap, 8192)
    nb = max(m, min(N, rows_cap // H))
    nb = max(m, (nb // m) * m)
    # v7x megacore: keep >= 2 grid steps when the batch allows it.
    if N >= 2 * m:
        nb = max(m, min(nb, ((N // 2) // m) * m))
    n_pad = ((N + nb - 1) // nb) * nb
    return nb, n_pad


def basic_block(x_nhwc, w1, s1, b1, w2, s2, b2):
    """Fused BasicBlock forward (identity shortcut, eval-mode BN).

    x_nhwc: (N, H, W, Cin);  w*: (3, 3, Cin, C) HWIO;  s*/b*: (C,) folded BN.
    """
    N, H, W, Cin = x_nhwc.shape
    C = w1.shape[-1]
    if Cin != C:
        raise ValueError(
            "identity-shortcut configuration requires in_planes == planes")
    # TODO(synk): strided / 1x1-downsample shortcut path not implemented in-kernel.

    WC = W * C
    WCp = ((WC + 127) // 128) * 128        # lane-dense (multiple-of-128) packing
    if WCp > 1024:
        raise NotImplementedError(
            "banded-weight layout only targets W*C <= 1024; use a channel-last "
            "channel-padded layout for large ResNet stages")

    nb, n_pad = _choose_batch_block(N, H, WCp)
    rows = nb * H
    assert rows % 8 == 0 and WCp % 128 == 0

    # Lane-dense packing: (N*H, W*C); row = n*H + h, lane = w*C + c.
    # Pad lanes to WCp and batch to n_pad (zero images, stripped afterwards).
    x2d = x_nhwc.reshape(N * H, WC)
    x2d = jnp.pad(x2d, ((0, (n_pad - N) * H), (0, WCp - WC)))

    # Layout plumbing (done once, outside the kernel): BN scale folded into the
    # bf16 banded weights; only the shift stays as a (1, WCp) operand.
    wb1 = _banded_weights(w1, s1, W, WCp)
    wb2 = _banded_weights(w2, s2, W, WCp)
    b1t = jnp.pad(jnp.tile(b1.reshape(1, C).astype(jnp.float32), (1, W)),
                  ((0, 0), (0, WCp - WC)))
    b2t = jnp.pad(jnp.tile(b2.reshape(1, C).astype(jnp.float32), (1, W)),
                  ((0, 0), (0, WCp - WC)))

    kernel = functools.partial(_basic_block_kernel, H)

    def make_call(single_buffer_consts):
        def const_spec(shape):
            idx_map = lambda i: (0,) * len(shape)
            if single_buffer_consts:
                # Grid-invariant operands: single-buffer to save VMEM (v7x).
                return pl.BlockSpec(shape, idx_map, pipeline_mode=pl.Buffered(1))
            return pl.BlockSpec(shape, idx_map)

        return pl.pallas_call(
            kernel,
            out_shape=jax.ShapeDtypeStruct((n_pad * H, WCp), x_nhwc.dtype),
            grid_spec=pltpu.PrefetchScalarGridSpec(
                num_scalar_prefetch=0,
                grid=(n_pad // nb,),
                in_specs=[
                    pl.BlockSpec((rows, WCp), lambda i: (i, 0)),
                    const_spec((3 * WCp, WCp)),
                    const_spec((1, WCp)),
                    const_spec((3 * WCp, WCp)),
                    const_spec((1, WCp)),
                ],
                out_specs=pl.BlockSpec((rows, WCp), lambda i: (i, 0)),
            ),
            compiler_params=pltpu.CompilerParams(
                dimension_semantics=("parallel",),
                vmem_limit_bytes=48 * 1024 * 1024),
        )

    args = (x2d, wb1, b1t, wb2, b2t)
    try:
        out2d = jax.block_until_ready(make_call(True)(*args))
    except Exception:
        # pipeline_mode=pl.Buffered(1) not accepted on this build; fall back to
        # default double-buffering of the grid-invariant operands.
        out2d = jax.block_until_ready(make_call(False)(*args))

    return out2d[:N * H, :WC].reshape(N, H, W, C)


def ref_basic_block(x_nhwc, w1, s1, b1, w2, s2, b2):
    """Pure-JAX reference (NHWC, f32)."""
    def conv3x3(x, w):
        return jax.lax.conv_general_dilated(
            x, w, window_strides=(1, 1), padding=((1, 1), (1, 1)),
            dimension_numbers=("NHWC", "HWIO", "NHWC"))
    out = jnp.maximum(conv3x3(x_nhwc, w1) * s1 + b1, 0.0)
    out = conv3x3(out, w2) * s2 + b2
    return jnp.maximum(out + x_nhwc, 0.0)


if __name__ == "__main__":
    # small shapes: batch=2, in_planes=planes=8, spatial=16x16, stride=1
    N, C, H, W = 2, 8, 16, 16
    key = jax.random.PRNGKey(0)
    ks = jax.random.split(key, 12)

    # input in PyTorch NCHW convention, then transposed to NHWC
    x_nchw = jax.random.normal(ks[0], (N, C, H, W), jnp.float32)
    x_nhwc = jnp.transpose(x_nchw, (0, 2, 3, 1))

    # conv weights: PyTorch OIHW, transposed to HWIO
    w1 = jnp.transpose(0.1 * jax.random.normal(ks[1], (C, C, 3, 3), jnp.float32),
                       (2, 3, 1, 0))
    w2 = jnp.transpose(0.1 * jax.random.normal(ks[2], (C, C, 3, 3), jnp.float32),
                       (2, 3, 1, 0))

    # BatchNorm (eval-mode) parameters, folded into per-channel scale/shift
    eps = 1e-5
    g1 = 1.0 + 0.1 * jax.random.normal(ks[3], (C,), jnp.float32)
    be1 = 0.1 * jax.random.normal(ks[4], (C,), jnp.float32)
    rm1 = 0.1 * jax.random.normal(ks[5], (C,), jnp.float32)
    rv1 = jnp.abs(1.0 + 0.1 * jax.random.normal(ks[6], (C,), jnp.float32))
    g2 = 1.0 + 0.1 * jax.random.normal(ks[7], (C,), jnp.float32)
    be2 = 0.1 * jax.random.normal(ks[8], (C,), jnp.float32)
    rm2 = 0.1 * jax.random.normal(ks[9], (C,), jnp.float32)
    rv2 = jnp.abs(1.0 + 0.1 * jax.random.normal(ks[10], (C,), jnp.float32))

    s1 = g1 / jnp.sqrt(rv1 + eps)
    b1 = be1 - rm1 * s1
    s2 = g2 / jnp.sqrt(rv2 + eps)
    b2 = be2 - rm2 * s2

    out = basic_block(x_nhwc, w1, s1, b1, w2, s2, b2)
    out = jax.block_until_ready(out)

    ref = ref_basic_block(x_nhwc, w1, s1, b1, w2, s2, b2)
    assert out.shape == (N, H, W, C)
    # Tolerance relaxed vs f32 reference because conv inputs/weights are rounded
    # to bf16 for the MXU (accumulation stays f32).
    assert jnp.allclose(out, ref, atol=3e-2, rtol=3e-2), "mismatch vs JAX reference"

    print("KERNEL_OK")
</pallas_src>

<mosaic_0001>
module attributes {stable_mosaic.version = 11 : i64} {
  func.func @_basic_block_kernel(%arg0: i32, %arg1: memref<16x128xf32, #tpu.memory_space<vmem>>, %arg2: memref<384x128xbf16, #tpu.memory_space<vmem>>, %arg3: memref<1x128xf32, #tpu.memory_space<vmem>>, %arg4: memref<384x128xbf16, #tpu.memory_space<vmem>>, %arg5: memref<1x128xf32, #tpu.memory_space<vmem>>, %arg6: memref<16x128xf32, #tpu.memory_space<vmem>>) attributes {dimension_semantics = [#tpu.dimension_semantics<parallel>], iteration_bounds = array<i64: 2>, scalar_prefetch = 0 : i64, scratch_operands = 0 : i64, tpu.core_type = #tpu.core_type<tc>, window_params = [{transform_indices = @transform_0, window_bounds = array<i64: 16, 128>}, {pipeline_mode = #tpu.pipeline_mode<synchronous>, transform_indices = @transform_1, window_bounds = array<i64: 384, 128>}, {pipeline_mode = #tpu.pipeline_mode<synchronous>, transform_indices = @transform_2, window_bounds = array<i64: 1, 128>}, {pipeline_mode = #tpu.pipeline_mode<synchronous>, transform_indices = @transform_3, window_bounds = array<i64: 384, 128>}, {pipeline_mode = #tpu.pipeline_mode<synchronous>, transform_indices = @transform_4, window_bounds = array<i64: 1, 128>}, {transform_indices = @transform_5, window_bounds = array<i64: 16, 128>}]} {
    %c0 = arith.constant 0 : index
    %c0_0 = arith.constant 0 : index
    %0 = vector.load %arg1[%c0, %c0_0] : memref<16x128xf32, #tpu.memory_space<vmem>>, vector<16x128xf32>
    %1 = tpu.iota {dimensions = array<i32: 0>} : vector<16x1xi32>
    %c16_i32 = arith.constant 16 : i32
    %c0_i32 = arith.constant 0 : i32
    %2 = arith.cmpi eq, %c16_i32, %c0_i32 : i32
    %c1_i32 = arith.constant 1 : i32
    %3 = arith.select %2, %c1_i32, %c16_i32 : i32
    %4 = vector.broadcast %3 : i32 to vector<16x1xi32>
    %5 = arith.remsi %1, %4 : vector<16x1xi32>
    %c0_i32_1 = arith.constant 0 : i32
    %6 = vector.broadcast %c0_i32_1 : i32 to vector<16x1xi32>
    %7 = arith.cmpi ne, %5, %6 : vector<16x1xi32>
    %c0_i32_2 = arith.constant 0 : i32
    %8 = vector.broadcast %c0_i32_2 : i32 to vector<16x1xi32>
    %9 = arith.cmpi slt, %5, %8 : vector<16x1xi32>
    %c0_i32_3 = arith.constant 0 : i32
    %10 = arith.cmpi slt, %3, %c0_i32_3 : i32
    %11 = vector.broadcast %10 : i1 to vector<16x1xi1>
    %12 = vector.broadcast %11 : vector<16x1xi1> to vector<16x1xi1>
    %13 = arith.xori %9, %12 : vector<16x1xi1>
    %14 = arith.andi %13, %7 : vector<16x1xi1>
    %15 = vector.broadcast %3 : i32 to vector<16x1xi32>
    %16 = arith.addi %5, %15 : vector<16x1xi32>
    %17 = arith.select %14, %16, %5 : vector<16x1xi1>, vector<16x1xi32>
    %c0_i32_4 = arith.constant 0 : i32
    %18 = vector.broadcast %c0_i32_4 : i32 to vector<16x1xi32>
    %19 = arith.cmpi ne, %17, %18 : vector<16x1xi32>
    %c15_i32 = arith.constant 15 : i32
    %20 = vector.broadcast %c15_i32 : i32 to vector<16x1xi32>
    %21 = arith.cmpi ne, %17, %20 : vector<16x1xi32>
    %c1_i32_5 = arith.constant 1 : i32
    %22 = tpu.dynamic_rotate %0 by %c1_i32_5 dim 0 : vector<16x128xf32>, i32 -> vector<16x128xf32>
    %cst = arith.constant 0.000000e+00 : f32
    %23 = vector.shape_cast %19 : vector<16x1xi1> to vector<16x1xi1>
    %24 = vector.broadcast %23 : vector<16x1xi1> to vector<16x128xi1>
    %25 = vector.broadcast %cst : f32 to vector<16x128xf32>
    %26 = arith.select %24, %22, %25 : vector<16x128xi1>, vector<16x128xf32>
    %c15_i32_6 = arith.constant 15 : i32
    %27 = tpu.dynamic_rotate %0 by %c15_i32_6 dim 0 : vector<16x128xf32>, i32 -> vector<16x128xf32>
    %cst_7 = arith.constant 0.000000e+00 : f32
    %28 = vector.shape_cast %21 : vector<16x1xi1> to vector<16x1xi1>
    %29 = vector.broadcast %28 : vector<16x1xi1> to vector<16x128xi1>
    %30 = vector.broadcast %cst_7 : f32 to vector<16x128xf32>
    %31 = arith.select %29, %27, %30 : vector<16x128xi1>, vector<16x128xf32>
    %32 = tpu.concatenate %26, %0, %31 in 1 : vector<16x128xf32>, vector<16x128xf32>, vector<16x128xf32> -> vector<16x384xf32>
    %33 = arith.truncf %32 : vector<16x384xf32> to vector<16x384xbf16>
    %c0_8 = arith.constant 0 : index
    %c0_9 = arith.constant 0 : index
    %34 = vector.load %arg2[%c0_8, %c0_9] : memref<384x128xbf16, #tpu.memory_space<vmem>>, vector<384x128xbf16>
    %cst_10 = arith.constant dense<0.000000e+00> : vector<16x128xf32>
    %35 = tpu.matmul %33, %34, %cst_10 {dimension_numbers = #tpu.dot_dimension_numbers<[1], [0], [0], [1], [0, 0, 1, 1], [], []>} : vector<16x384xbf16>, vector<384x128xbf16>, vector<16x128xf32> -> vector<16x128xf32>
    %c0_11 = arith.constant 0 : index
    %c0_12 = arith.constant 0 : index
    %36 = vector.load %arg3[%c0_11, %c0_12] : memref<1x128xf32, #tpu.memory_space<vmem>>, vector<1x128xf32>
    %37 = vector.broadcast %36 : vector<1x128xf32> to vector<16x128xf32>
    %38 = arith.addf %35, %37 : vector<16x128xf32>
    %cst_13 = arith.constant 0.000000e+00 : f32
    %39 = vector.broadcast %cst_13 : f32 to vector<16x128xf32>
    %40 = arith.maximumf %38, %39 : vector<16x128xf32>
    %c1_i32_14 = arith.constant 1 : i32
    %41 = tpu.dynamic_rotate %40 by %c1_i32_14 dim 0 : vector<16x128xf32>, i32 -> vector<16x128xf32>
    %cst_15 = arith.constant 0.000000e+00 : f32
    %42 = vector.shape_cast %19 : vector<16x1xi1> to vector<16x1xi1>
    %43 = vector.broadcast %42 : vector<16x1xi1> to vector<16x128xi1>
    %44 = vector.broadcast %cst_15 : f32 to vector<16x128xf32>
    %45 = arith.select %43, %41, %44 : vector<16x128xi1>, vector<16x128xf32>
    %c15_i32_16 = arith.constant 15 : i32
    %46 = tpu.dynamic_rotate %40 by %c15_i32_16 dim 0 : vector<16x128xf32>, i32 -> vector<16x128xf32>
    %cst_17 = arith.constant 0.000000e+00 : f32
    %47 = vector.shape_cast %21 : vector<16x1xi1> to vector<16x1xi1>
    %48 = vector.broadcast %47 : vector<16x1xi1> to vector<16x128xi1>
    %49 = vector.broadcast %cst_17 : f32 to vector<16x128xf32>
    %50 = arith.select %48, %46, %49 : vector<16x128xi1>, vector<16x128xf32>
    %51 = tpu.concatenate %45, %40, %50 in 1 : vector<16x128xf32>, vector<16x128xf32>, vector<16x128xf32> -> vector<16x384xf32>
    %52 = arith.truncf %51 : vector<16x384xf32> to vector<16x384xbf16>
    %c0_18 = arith.constant 0 : index
    %c0_19 = arith.constant 0 : index
    %53 = vector.load %arg4[%c0_18, %c0_19] : memref<384x128xbf16, #tpu.memory_space<vmem>>, vector<384x128xbf16>
    %cst_20 = arith.constant dense<0.000000e+00> : vector<16x128xf32>
    %54 = tpu.matmul %52, %53, %cst_20 {dimension_numbers = #tpu.dot_dimension_numbers<[1], [0], [0], [1], [0, 0, 1, 1], [], []>} : vector<16x384xbf16>, vector<384x128xbf16>, vector<16x128xf32> -> vector<16x128xf32>
    %c0_21 = arith.constant 0 : index
    %c0_22 = arith.constant 0 : index
    %55 = vector.load %arg5[%c0_21, %c0_22] : memref<1x128xf32, #tpu.memory_space<vmem>>, vector<1x128xf32>
    %56 = vector.broadcast %55 : vector<1x128xf32> to vector<16x128xf32>
    %57 = arith.addf %54, %56 : vector<16x128xf32>
    %58 = arith.addf %57, %0 : vector<16x128xf32>
    %cst_23 = arith.constant 0.000000e+00 : f32
    %59 = vector.broadcast %cst_23 : f32 to vector<16x128xf32>
    %60 = arith.maximumf %58, %59 : vector<16x128xf32>
    %c0_24 = arith.constant 0 : index
    %c0_25 = arith.constant 0 : index
    %61 = vector.load %arg6[%c0_24, %c0_25] : memref<16x128xf32, #tpu.memory_space<vmem>>, vector<16x128xf32>
    tpu.vector_store %arg6[%c0_24, %c0_25], %60 {strides = array<i32>} : memref<16x128xf32, #tpu.memory_space<vmem>>, vector<16x128xf32>,
    return
  }
  func.func @transform_0(%arg0: i32) -> (i32, i32) {
    %c0_i32 = arith.constant 0 : i32
    %c0_i32_0 = arith.constant 0 : i32
    return %arg0, %c0_i32 : i32, i32
  }
  func.func @transform_1(%arg0: i32) -> (i32, i32) {
    %c0_i32 = arith.constant 0 : i32
    %c0_i32_0 = arith.constant 0 : i32
    %c0_i32_1 = arith.constant 0 : i32
    return %c0_i32, %c0_i32_0 : i32, i32
  }
  func.func @transform_2(%arg0: i32) -> (i32, i32) {
    %c0_i32 = arith.constant 0 : i32
    %c0_i32_0 = arith.constant 0 : i32
    %c0_i32_1 = arith.constant 0 : i32
    return %c0_i32, %c0_i32_0 : i32, i32
  }
  func.func @transform_3(%arg0: i32) -> (i32, i32) {
    %c0_i32 = arith.constant 0 : i32
    %c0_i32_0 = arith.constant 0 : i32
    %c0_i32_1 = arith.constant 0 : i32
    return %c0_i32, %c0_i32_0 : i32, i32
  }
  func.func @transform_4(%arg0: i32) -> (i32, i32) {
    %c0_i32 = arith.constant 0 : i32
    %c0_i32_0 = arith.constant 0 : i32
    %c0_i32_1 = arith.constant 0 : i32
    return %c0_i32, %c0_i32_0 : i32, i32
  }
  func.func @transform_5(%arg0: i32) -> (i32, i32) {
    %c0_i32 = arith.constant 0 : i32
    %c0_i32_0 = arith.constant 0 : i32
    return %arg0, %c0_i32 : i32, i32
  }
}

module attributes {stable_mosaic.version = 11 : i64} {
  func.func @_basic_block_kernel(%arg0: i32, %arg1: memref<16x128xf32, #tpu.memory_space<vmem>>, %arg2: memref<384x128xbf16, #tpu.memory_space<vmem>>, %arg3: memref<1x128xf32, #tpu.memory_space<vmem>>, %arg4: memref<384x128xbf16, #tpu.memory_space<vmem>>, %arg5: memref<1x128xf32, #tpu.memory_space<vmem>>, %arg6: memref<16x128xf32, #tpu.memory_space<vmem>>) attributes {dimension_semantics = [#tpu.dimension_semantics<parallel>], iteration_bounds = array<i64: 2>, scalar_prefetch = 0 : i64, scratch_operands = 0 : i64, tpu.core_type = #tpu.core_type<tc>, window_params = [{transform_indices = @transform_0, window_bounds = array<i64: 16, 128>}, {pipeline_mode = #tpu.pipeline_mode<synchronous>, transform_indices = @transform_1, window_bounds = array<i64: 384, 128>}, {pipeline_mode = #tpu.pipeline_mode<synchronous>, transform_indices = @transform_2, window_bounds = array<i64: 1, 128>}, {pipeline_mode = #tpu.pipeline_mode<synchronous>, transform_indices = @transform_3, window_bounds = array<i64: 384, 128>}, {pipeline_mode = #tpu.pipeline_mode<synchronous>, transform_indices = @transform_4, window_bounds = array<i64: 1, 128>}, {transform_indices = @transform_5, window_bounds = array<i64: 16, 128>}]} {
    %c0 = arith.constant 0 : index
    %c0_0 = arith.constant 0 : index
    %0 = vector.load %arg1[%c0, %c0_0] : memref<16x128xf32, #tpu.memory_space<vmem>>, vector<16x128xf32>
    %1 = tpu.iota {dimensions = array<i32: 0>} : vector<16x1xi32>
    %c16_i32 = arith.constant 16 : i32
    %c0_i32 = arith.constant 0 : i32
    %2 = arith.cmpi eq, %c16_i32, %c0_i32 : i32
    %c1_i32 = arith.constant 1 : i32
    %3 = arith.select %2, %c1_i32, %c16_i32 : i32
    %4 = vector.broadcast %3 : i32 to vector<16x1xi32>
    %5 = arith.remsi %1, %4 : vector<16x1xi32>
    %c0_i32_1 = arith.constant 0 : i32
    %6 = vector.broadcast %c0_i32_1 : i32 to vector<16x1xi32>
    %7 = arith.cmpi ne, %5, %6 : vector<16x1xi32>
    %c0_i32_2 = arith.constant 0 : i32
    %8 = vector.broadcast %c0_i32_2 : i32 to vector<16x1xi32>
    %9 = arith.cmpi slt, %5, %8 : vector<16x1xi32>
    %c0_i32_3 = arith.constant 0 : i32
    %10 = arith.cmpi slt, %3, %c0_i32_3 : i32
    %11 = vector.broadcast %10 : i1 to vector<16x1xi1>
    %12 = vector.broadcast %11 : vector<16x1xi1> to vector<16x1xi1>
    %13 = arith.xori %9, %12 : vector<16x1xi1>
    %14 = arith.andi %13, %7 : vector<16x1xi1>
    %15 = vector.broadcast %3 : i32 to vector<16x1xi32>
    %16 = arith.addi %5, %15 : vector<16x1xi32>
    %17 = arith.select %14, %16, %5 : vector<16x1xi1>, vector<16x1xi32>
    %c0_i32_4 = arith.constant 0 : i32
    %18 = vector.broadcast %c0_i32_4 : i32 to vector<16x1xi32>
    %19 = arith.cmpi ne, %17, %18 : vector<16x1xi32>
    %c15_i32 = arith.constant 15 : i32
    %20 = vector.broadcast %c15_i32 : i32 to vector<16x1xi32>
    %21 = arith.cmpi ne, %17, %20 : vector<16x1xi32>
    %c1_i32_5 = arith.constant 1 : i32
    %22 = tpu.dynamic_rotate %0 by %c1_i32_5 dim 0 : vector<16x128xf32>, i32 -> vector<16x128xf32>
    %cst = arith.constant 0.000000e+00 : f32
    %23 = vector.shape_cast %19 : vector<16x1xi1> to vector<16x1xi1>
    %24 = vector.broadcast %23 : vector<16x1xi1> to vector<16x128xi1>
    %25 = vector.broadcast %cst : f32 to vector<16x128xf32>
    %26 = arith.select %24, %22, %25 : vector<16x128xi1>, vector<16x128xf32>
    %c15_i32_6 = arith.constant 15 : i32
    %27 = tpu.dynamic_rotate %0 by %c15_i32_6 dim 0 : vector<16x128xf32>, i32 -> vector<16x128xf32>
    %cst_7 = arith.constant 0.000000e+00 : f32
    %28 = vector.shape_cast %21 : vector<16x1xi1> to vector<16x1xi1>
    %29 = vector.broadcast %28 : vector<16x1xi1> to vector<16x128xi1>
    %30 = vector.broadcast %cst_7 : f32 to vector<16x128xf32>
    %31 = arith.select %29, %27, %30 : vector<16x128xi1>, vector<16x128xf32>
    %32 = tpu.concatenate %26, %0, %31 in 1 : vector<16x128xf32>, vector<16x128xf32>, vector<16x128xf32> -> vector<16x384xf32>
    %33 = arith.truncf %32 : vector<16x384xf32> to vector<16x384xbf16>
    %c0_8 = arith.constant 0 : index
    %c0_9 = arith.constant 0 : index
    %34 = vector.load %arg2[%c0_8, %c0_9] : memref<384x128xbf16, #tpu.memory_space<vmem>>, vector<384x128xbf16>
    %cst_10 = arith.constant dense<0.000000e+00> : vector<16x128xf32>
    %35 = tpu.matmul %33, %34, %cst_10 {dimension_numbers = #tpu.dot_dimension_numbers<[1], [0], [0], [1], [0, 0, 1, 1], [], []>} : vector<16x384xbf16>, vector<384x128xbf16>, vector<16x128xf32> -> vector<16x128xf32>
    %c0_11 = arith.constant 0 : index
    %c0_12 = arith.constant 0 : index
    %36 = vector.load %arg3[%c0_11, %c0_12] : memref<1x128xf32, #tpu.memory_space<vmem>>, vector<1x128xf32>
    %37 = vector.broadcast %36 : vector<1x128xf32> to vector<16x128xf32>
    %38 = arith.addf %35, %37 : vector<16x128xf32>
    %cst_13 = arith.constant 0.000000e+00 : f32
    %39 = vector.broadcast %cst_13 : f32 to vector<16x128xf32>
    %40 = arith.maximumf %38, %39 : vector<16x128xf32>
    %c1_i32_14 = arith.constant 1 : i32
    %41 = tpu.dynamic_rotate %40 by %c1_i32_14 dim 0 : vector<16x128xf32>, i32 -> vector<16x128xf32>
    %cst_15 = arith.constant 0.000000e+00 : f32
    %42 = vector.shape_cast %19 : vector<16x1xi1> to vector<16x1xi1>
    %43 = vector.broadcast %42 : vector<16x1xi1> to vector<16x128xi1>
    %44 = vector.broadcast %cst_15 : f32 to vector<16x128xf32>
    %45 = arith.select %43, %41, %44 : vector<16x128xi1>, vector<16x128xf32>
    %c15_i32_16 = arith.constant 15 : i32
    %46 = tpu.dynamic_rotate %40 by %c15_i32_16 dim 0 : vector<16x128xf32>, i32 -> vector<16x128xf32>
    %cst_17 = arith.constant 0.000000e+00 : f32
    %47 = vector.shape_cast %21 : vector<16x1xi1> to vector<16x1xi1>
    %48 = vector.broadcast %47 : vector<16x1xi1> to vector<16x128xi1>
    %49 = vector.broadcast %cst_17 : f32 to vector<16x128xf32>
    %50 = arith.select %48, %46, %49 : vector<16x128xi1>, vector<16x128xf32>
    %51 = tpu.concatenate %45, %40, %50 in 1 : vector<16x128xf32>, vector<16x128xf32>, vector<16x128xf32> -> vector<16x384xf32>
    %52 = arith.truncf %51 : vector<16x384xf32> to vector<16x384xbf16>
    %c0_18 = arith.constant 0 : index
    %c0_19 = arith.constant 0 : index
    %53 = vector.load %arg4[%c0_18, %c0_19] : memref<384x128xbf16, #tpu.memory_space<vmem>>, vector<384x128xbf16>
    %cst_20 = arith.constant dense<0.000000e+00> : vector<16x128xf32>
    %54 = tpu.matmul %52, %53, %cst_20 {dimension_numbers = #tpu.dot_dimension_numbers<[1], [0], [0], [1], [0, 0, 1, 1], [], []>} : vector<16x384xbf16>, vector<384x128xbf16>, vector<16x128xf32> -> vector<16x128xf32>
    %c0_21 = arith.constant 0 : index
    %c0_22 = arith.constant 0 : index
    %55 = vector.load %arg5[%c0_21, %c0_22] : memref<1x128xf32, #tpu.memory_space<vmem>>, vector<1x128xf32>
    %56 = vector.broadcast %55 : vector<1x128xf32> to vector<16x128xf32>
    %57 = arith.addf %54, %56 : vector<16x128xf32>
    %58 = arith.addf %57, %0 : vector<16x128xf32>
    %cst_23 = arith.constant 0.000000e+00 : f32
    %59 = vector.broadcast %cst_23 : f32 to vector<16x128xf32>
    %60 = arith.maximumf %58, %59 : vector<16x128xf32>
    %c0_24 = arith.constant 0 : index
    %c0_25 = arith.constant 0 : index
    %61 = vector.load %arg6[%c0_24, %c0_25] : memref<16x128xf32, #tpu.memory_space<vmem>>, vector<16x128xf32>
    tpu.vector_store %arg6[%c0_24, %c0_25], %60 {strides = array<i32>} : memref<16x128xf32, #tpu.memory_space<vmem>>, vector<16x128xf32>,
    return
  }
  func.func @transform_0(%arg0: i32) -> (i32, i32) {
    %c0_i32 = arith.constant 0 : i32
    %c0_i32_0 = arith.constant 0 : i32
    return %arg0, %c0_i32 : i32, i32
  }
  func.func @transform_1(%arg0: i32) -> (i32, i32) {
    %c0_i32 = arith.constant 0 : i32
    %c0_i32_0 = arith.constant 0 : i32
    %c0_i32_1 = arith.constant 0 : i32
    return %c0_i32, %c0_i32_0 : i32, i32
  }
  func.func @transform_2(%arg0: i32) -> (i32, i32) {
    %c0_i32 = arith.constant 0 : i32
    %c0_i32_0 = arith.constant 0 : i32
    %c0_i32_1 = arith.constant 0 : i32
    return %c0_i32, %c0_i32_0 : i32, i32
  }
  func.func @transform_3(%arg0: i32) -> (i32, i32) {
    %c0_i32 = arith.constant 0 : i32
    %c0_i32_0 = arith.constant 0 : i32
    %c0_i32_1 = arith.constant 0 : i32
    return %c0_i32, %c0_i32_0 : i32, i32
  }
  func.func @transform_4(%arg0: i32) -> (i32, i32) {
    %c0_i32 = arith.constant 0 : i32
    %c0_i32_0 = arith.constant 0 : i32
    %c0_i32_1 = arith.constant 0 : i32
    return %c0_i32, %c0_i32_0 : i32, i32
  }
  func.func @transform_5(%arg0: i32) -> (i32, i32) {
    %c0_i32 = arith.constant 0 : i32
    %c0_i32_0 = arith.constant 0 : i32
    return %arg0, %c0_i32 : i32, i32
  }
}

</mosaic_0001>

<bundles_post_ra>
// kernel: tpu_custom_call.1
= control target key start
LH: loop header
LB: loop body
LE: loop exit
PB: predicated region body
PF: predicated region fallthrough
CT: control target
= control target key end

     0   :  { %10 = vsyncpa [#allocation3], 0  ;;  %s1803_s0 = inlined_call_operand.hbm [shape: f32[32,128], index: 0, kind: input, shape index: {}]   ;;  %s1804_s1 = inlined_call_operand.hbm [shape: bf16[384,128], index: 1, kind: input, shape index: {}]   ;;  %s1805_s2 = inlined_call_operand.vmem [shape: f32[1,128], index: 2, kind: input, shape index: {}]   ;;  %s1806_s3 = inlined_call_operand.hbm [shape: bf16[384,128], index: 3, kind: input, shape index: {}]   ;;  %s1807_s4 = inlined_call_operand.vmem [shape: f32[1,128], index: 4, kind: input, shape index: {}]   ;;  %s1808_s5 = inlined_call_operand.hbm [shape: f32[32,128], index: 5, kind: output, shape index: {}]  }
   0x1   :  { %12 = vsyncpa [#allocation3 + $0x1], 0 }
   0x2   :  { %13 = vsyncpa [#allocation6], 0 }
   0x3   :  { %14 = vsyncpa [#allocation4], 0 }
   0x4   :  { %16 = vsyncpa [#allocation4 + $0x1], 0  ;;  %s1525_s18 = smov 0   ;;  %s1527_s19 = smov 0  }
   0x5   :  { %s1529_s20 = smov 0   ;;  %s1531_s21 = smov 0  }
   0x6 LB: > { %s1546_s22 = sadd.s32 4294967295, %s1480_s21   ;;  %s1024_s23 = sadd.s32 4294967294, %s1480_s21   ;;  %s1480_s21 = sphi %s1531_s21, %s1836_s21   ;;  %s1476_s20 = sphi %s1529_s20, %s1835_s20   ;;  %s1472_s19 = sphi %s1527_s19, %s1834_s19   ;;  %s1468_s18 = sphi %s1525_s18, %s1833_s18  }
   0x7   : > { %p42_p0 = scmp.ne.s32.totalorder %s1472_s19, %s1468_s18  ;;  %p1809_p1 = scmp.eq.s32.totalorder %s1546_s22, 0 }
   0x8   : > { %p156_p3 = scmp.eq.s32.totalorder %s1024_s23, 1  ;;  %p1025_p5 = scmp.ge.s32.totalorder %s1480_s21, 1 }
   0x9   : > { %p1555_p4 = por %p1809_p1, %p42_p0  ;;  %p163_p7 = scmp.lt.s32.totalorder %s1480_s21, 3 }
   0xa   : > { %p1560_p6 = por %p156_p3, %p42_p0  ;;  %s1482_s27 = smov [#allocation5]  }
   0xb   : > { %s1813_s24 = scalar_select %p1555_p4, 1, 0 }
   0xc   : > { %s1814_s25 = scalar_select %p1560_p6, 1, 0 }
   0xd   : > { %p1565_p8 = pnand %p1025_p5, %p163_p7  ;;  %s175_s28 = sshll.u32 %s1482_s27, 4  ;;  %s176_s28 = int_to_ptr.vmem [resolvable:$true] %s175_s28 }
   0xe   : > { %s1483_s30 = smov [#allocation7]   ;;  %s1343_s7 = scalar_lea.vmem %s176_s28, 3072 }
   0xf   : > { %s1815_s26 = scalar_select %p1565_p8, 1, 0 }
  0x10   : > { %p1220_p9 = pneg %p1565_p8  ;;  %s191_s6 = sshll.u32 %s1483_s30, 4  ;;  %s192_s6 = int_to_ptr.vmem [resolvable:$true] %s191_s6 }
  0x11   : > { %p1344_p13 = scmp.ne.s32.totalorder %s176_s28, %s1343_s7  ;;  %p1351_p5 = scmp.lt.s32.totalorder %s176_s28, %s176_s28 }
  0x12   : > { %p1574_p11 = pnand %p1220_p9, %p1809_p1  ;;  %p1352_p7 = scmp.lt.s32.totalorder %s1343_s7, %s1343_s7 }
  0x14   : > { %p1334_p12 = pneg %p1574_p11  ;;  %p1353_p10 = por %p1352_p7, %p1351_p5 }
  0x16   : > { %p1346_p0 = pnand %p1344_p13, %p1334_p12 }
  0x18   : > { %p1347_p3 = pneg %p1346_p0 }
  0x1a   : > { %p1354_p9 = pnand %p1353_p10, %p1347_p3 }
  0x1c   : > { %1357 = shalt.err (!%p1354_p9)
}
  0x1d   : > { %s1484_s8 = smov 64   ;;  %s1485_s9 = smov 4  }
  0x1e   : > { %1223 = dma.hbm_to_vmem [thread:$0]  (!%p1574_p11), %s1804_s1, 3072, %s176_s28, [#allocation6], %s1484_s8, %s1484_s8, %s1485_s9  }
  0x1f   : > { %s1369_s12 = scalar_lea.vmem %s192_s6, 3072  ;;  %p1377_p2 = scmp.lt.s32.totalorder %s192_s6, %s192_s6 }
  0x20   : > { %p1370_p1 = scmp.ne.s32.totalorder %s192_s6, %s1369_s12  ;;  %p1378_p6 = scmp.lt.s32.totalorder %s1369_s12, %s1369_s12 }
  0x22   : > { %p1372_p13 = pnand %p1370_p1, %p1334_p12  ;;  %p1379_p5 = por %p1378_p6, %p1377_p2 }
  0x24   : > { %p1373_p0 = pneg %p1372_p13 }
  0x26   : > { %p1380_p10 = pnand %p1379_p5, %p1373_p0 }
  0x28   : > { %1383 = shalt.err (!%p1380_p10)
}
  0x29   : > { %1226 = dma.hbm_to_vmem [thread:$0]  (!%p1574_p11), %s1806_s3, 3072, %s192_s6, [#allocation6], %s1484_s8, %s1484_s8, %s1485_s9  }
  0x2a   : > { %s1597_s15 = sadd.s32 1, %s1480_s21   ;;  %s29_s16 = sadd.s32 1, %s1476_s20 }
  0x2b   : > { %s26_s17 = ssub.s32 %s1480_s21, %s1597_s15  ;;  %p36_p1 = scmp.ne.s32.totalorder %s1476_s20, %s1472_s19 }
  0x2c   : > { %p27_p2 = scmp.eq.s32.totalorder %s26_s17, 0  ;;  %p37_p6 = scmp.eq.s32.totalorder %s1480_s21, 0 }
  0x2d   : > { %p1817_p12 = scmp.eq.s32.totalorder %s1546_s22, 1  ;;  %p1237_p7 = scmp.lt.s32.totalorder %s1480_s21, 2 }
  0x2e   : > { %s1613_s27 = scalar_select %p27_p2, %s1476_s20, %s29_s16  }
  0x2f   : > { %p1607_p3 = por %p1817_p12, %p36_p1  ;;  %p38_p9 = por %p37_p6, %p36_p1 }
  0x30   : > { %s208_s28 = sand.u32 1, %s1476_s20   ;;  %s1104_s30 = sshll.u32 %s1480_s21, 8 }
  0x31   : > { %s1818_s23 = scalar_select %p1607_p3, 1, 0 }
  0x32   : > { %s1029_s29 = sshll.u32 %s208_s28, 4  ;;  %s1620_s8 = scalar_lea.hbm %s1803_s0, %s1104_s30 }
  0x33   : > { %s212_s9 = scalar_lea.vmem [#allocation2], %s1029_s29  ;;  %p1624_p11 = pnand %p1237_p7, %p38_p9 }
  0x34   : > { %s219_s10 = sshll.u32 %s212_s9, 4  ;;  %s1628_s12 = scalar_lea.sflag [#allocation3], %s208_s28  ;;  %s1622_s10 = int_to_ptr.vmem [resolvable:$true] %s219_s10 }
  0x35   : > { %s1384_s13 = scalar_lea.hbm %s1620_s8, 256  ;;  %p1386_p0 = pneg %p1624_p11 }
  0x36   : > { %p1385_p13 = scmp.ne.s32.totalorder %s1620_s8, %s1384_s13  ;;  %s1389_s17 = scalar_lea.hbm %s1803_s0, 512 }
  0x37   : > { %p1390_p1 = scmp.lt.s32.totalorder %s1620_s8, %s1803_s0  ;;  %p1391_p2 = scmp.lt.s32.totalorder %s1389_s17, %s1384_s13 }
  0x38   : > { %p1387_p5 = pnand %p1386_p0, %p1385_p13 }
  0x39   : > { %p1392_p6 = por %p1391_p2, %p1390_p1 }
  0x3a   : > { %p1388_p10 = pneg %p1387_p5 }
  0x3c   : > { %p1393_p12 = pnand %p1392_p6, %p1388_p10 }
  0x3e   : > { %1396 = shalt.err (!%p1393_p12)
}
  0x3f   : > { %s1397_s28 = scalar_lea.vmem %s1622_s10, 256  ;;  %s1486_s6 = smov [#allocation2]  }
  0x40   : > { %p1398_p7 = scmp.ne.s32.totalorder %s1622_s10, %s1397_s28  ;;  %s1402_s7 = sshll.u32 %s1486_s6, 4  ;;  %s1403_s7 = int_to_ptr.vmem [resolvable:$false] %s1402_s7 }
  0x41   : > { %s1404_s9 = scalar_lea.vmem %s1403_s7, 512  ;;  %p1405_p5 = scmp.lt.s32.totalorder %s1622_s10, %s1403_s7 }
  0x42   : > { %p1400_p9 = pnand %p1398_p7, %p1386_p0  ;;  %p1406_p3 = scmp.lt.s32.totalorder %s1404_s9, %s1397_s28 }
  0x44   : > { %p1401_p13 = pneg %p1400_p9  ;;  %p1407_p4 = por %p1406_p3, %p1405_p5 }
  0x46   : > { %p1408_p8 = pnand %p1407_p4, %p1401_p13 }
  0x48   : > { %1411 = shalt.err (!%p1408_p8)
}
  0x49   : > { %s1487_s13 = smov 128   ;;  %s1488_s14 = smov 8  }
  0x4a   : > { %1230 = dma.hbm_to_vmem [thread:$0]  (!%p1624_p11), %s1620_s8, 256, %s1622_s10, %s1628_s12, %s1487_s13, %s1487_s13, %s1488_s14  }
  0x4b   : > { %p1820_p0 = scmp.ne.s32.totalorder %s1815_s26, 0 }
  0x4c   : > { %s1652_s16 = sand.u32 (!%p1820_p0), 1, %s1472_s19   ;;  %p1821_p4 = scmp.ne.s32.totalorder (!%p1820_p0), %s1813_s24, 0 }
  0x4d   : > { %231 = sbr.rel (%p1820_p0) target bundleno = 555 (0x22b), region = 40  ;;  %s1033_s17 = sshll.u32 (!%p1820_p0), %s1652_s16, 4 }
  0x4e   : > { %s234_s29 = scalar_lea.sflag (!%p1820_p0), [#allocation3], %s1652_s16  ;;  %s1658_s30 = scalar_lea.vmem (!%p1820_p0), [#allocation2], %s1033_s17 }
  0x52   : > { %1455 = dma.done.wait (%p1821_p4), %s234_s29, 256  }
  0x53   : > { %1457 = vsyncadd (%p1821_p4), %s234_s29, 4294967040  ;;  %p1822_p8 = scmp.eq.s32.totalorder %s1546_s22, 0 }
  0x55   : > { %1459 = dma.done.wait (%p1822_p8), [#allocation6], 6144   ;;  %p1823_p3 = pmov %p1822_p8 }
  0x56   : > { %v1489_v0 = vmov 0.0   ;;  %vm1490_vm0 = vmmov 0   ;;  %v1284_v1 = vld [vmem:[#allocation5 + $0x78] sm:$0xff]   ;;  %v1287_v4 = vld [vmem:[#allocation5 + $0x70] sm:$0xff]   ;;  %v1290_v7 = vld [vmem:[#allocation5 + $0x68] sm:$0xff]   ;;  %v277_v12 = vlaneseq  ;;  %vm1491_vm5 = vmmov 1  }
  0x57   : > { %1461 = vsyncadd (%p1823_p3), [#allocation6], 4294961152  ;;  %1168 = vmatprep.subr.bf16.mxu1 %v1489_v0  ;;  %1184 = vmatprep.mubr.msk.bf16.mxu1 %vm1490_vm0, %v1489_v0  ;;  %v1285_v2 = vld [vmem:[#allocation5 + $0x38] sm:$0xff]   ;;  %v1288_v5 = vld [vmem:[#allocation5 + $0x30] sm:$0xff]   ;;  %s1105_s11 = sshll.u32 %s1546_s22, 8  ;;  %s271_s12 = scalar_lea.vmem [#allocation8], %s1033_s17 }
  0x58   : > { %1106 = vmatprep.subr.bf16.mxu0 %v1284_v1  ;;  %v1286_v3 = vld [vmem:[#allocation5 + $0xb8] sm:$0xff]   ;;  %v1289_v6 = vld [vmem:[#allocation5 + $0xb0] sm:$0xff]   ;;  %v1291_v8 = vld [vmem:[#allocation5 + $0x28] sm:$0xff]   ;;  %v1674_v16 = vshrl.u32 %v277_v12, 7  ;;  %s932_s28 = sshll.u32 %s271_s12, 4  ;;  %s1758_s9 = scalar_lea.hbm %s1808_s5, %s1105_s11  ;;  %s1760_s28 = int_to_ptr.vmem [resolvable:$true] %s932_s28 }
  0x59   : > { %1107 = vmatpush3.bf16.msra.mxu0 %v1285_v2  ;;  %1169 = vmatpush3.bf16.msra.mxu1 %v1286_v3  ;;  %v1292_v9 = vld [vmem:[#allocation5 + $0xa8] sm:$0xff]   ;;  %v1293_v10 = vld [vmem:[#allocation5 + $0x60] sm:$0xff]   ;;  %v1296_v14 = vld [vmem:[#allocation5 + $0x58] sm:$0xff]   ;;  %s919_s13 = scalar_lea.sflag [#allocation4], %s1652_s16  ;;  %s1412_s22 = scalar_lea.vmem %s1760_s28, 256 }
  0x5a   : > { %1108 = vmatprep.subr.bf16.mxu0 %v1287_v4  ;;  %1170 = vmatprep.subr.bf16.mxu1 %v1489_v0  ;;  %v1294_v11 = vld [vmem:[#allocation5 + $0x20] sm:$0xff]   ;;  %v1297_v15 = vld [vmem:[#allocation5 + $0x18] sm:$0xff]   ;;  %v1299_v18 = vld [vmem:[#allocation5 + $0x50] sm:$0xff]   ;;  %v279_v20 = vadd.s32 8, %v1674_v16  ;;  %v284_v23 = vand.u32 15, %v1674_v16  ;;  %vm310_vm2 = vcmp.lt.s32.totalorder %v1674_v16, 1  ;;  %p1413_p11 = scmp.ne.s32.totalorder %s1760_s28, %s1412_s22 }
  0x5b   : > { %v1295_v13 = vld [vmem:[#allocation5 + $0xa0] sm:$0xff]   ;;  %v1298_v17 = vld [vmem:[#allocation5 + $0x98] sm:$0xff]   ;;  %v1300_v19 = vld [vmem:[#allocation5 + $0x10] sm:$0xff]   ;;  %vm321_vm3 = vcmp.lt.s32.totalorder %v1674_v16, 7  ;;  %p1830_p10 = scmp.ne.s32.totalorder %s1818_s23, 0  ;;  %s1492_s14 = smov [#allocation8]  }
  0x5c   : > { %v1301_v21 = vld [vmem:[#allocation5 + $0x90] sm:$0xff]   ;;  %v1302_v22 = vld [vmem:[#allocation5 + $0x48] sm:$0xff]   ;;  %v291_v25 = vand.u32 15, %v279_v20  ;;  %v1305_v27 = vld [vmem:[#allocation5 + $0x40] sm:$0xff]   ;;  %vm1686_vm1 = vcmp.ne.s32.totalorder %v284_v23, 0  ;;  %s1416_s17 = sshll.u32 %s1492_s14, 4  ;;  %s1417_s17 = int_to_ptr.vmem [resolvable:$false] %s1416_s17 }
  0x5d   : > { %1109 = vmatpush3.bf16.msra.mxu0 %v1288_v5  ;;  %1171 = vmatpush3.bf16.msra.mxu1 %v1289_v6  ;;  %v1303_v24 = vld [vmem:[#allocation5 + $0x8] sm:$0xff]   ;;  %v1681_v28 = vld [vmem:[%s1658_s30] sm:$0xff]  ;;  %vm1705_vm6 = vmpackc.low %vm1491_vm5, %vm1686_vm1  ;;  %p1414_p1 = pnand %p1413_p11, %p1830_p10  ;;  %s1418_s29 = scalar_lea.vmem %s1417_s17, 512 }
  0x5e   : > { %1110 = vmatprep.subr.bf16.mxu0 %v1290_v7  ;;  %1172 = vmatprep.subr.bf16.mxu1 %v1489_v0  ;;  %v1304_v26 = vld [vmem:[#allocation5 + $0x88] sm:$0xff]   ;;  %v1306_v31 = vld [vmem:[#allocation5] sm:$0xff]   ;;  %v308_v32 = vrot.slane %v1681_v28, 7  ;;  %v319_v34 = vrot.slane %v1681_v28, 1  ;;  %vm307_vm4 = vcmp.ne.s32.totalorder %v291_v25, 15  ;;  %v1308_v43 = vld [vmem:[#allocation7 + $0x78] sm:$0xff]   ;;  %p1419_p6 = scmp.lt.s32.totalorder %s1760_s28, %s1417_s17  ;;  %p1420_p12 = scmp.lt.s32.totalorder %s1418_s29, %s1412_s22 }
  0x5f   : > { %v1684_v29 = vld [vmem:[%s1658_s30 + $0x8] sm:$0xff]  ;;  %v1307_v36 = vld [vmem:[#allocation5 + $0x80] sm:$0xff]   ;;  %vm1714_vm7 = vmpackc.low %vm307_vm4, %vm1491_vm5  ;;  %p1415_p2 = pneg %p1414_p1 }
  0x60   : > { %v309_v33 = vrot.slane %v1684_v29, 7  ;;  %v320_v35 = vrot.slane %v1684_v29, 1  ;;  %v331_v37 = vpack.c.bf16 %v1684_v29, %v1681_v28  ;;  %v1309_v46 = vld [vmem:[#allocation7 + $0x38] sm:$0xff]   ;;  %v1311_v49 = vld [vmem:[#allocation7 + $0x70] sm:$0xff]   ;;  %v1314_v52 = vld [vmem:[#allocation7 + $0x68] sm:$0xff]   ;;  %p1421_p7 = por %p1420_p12, %p1419_p6 }
  0x61   : > { %1111 = vmatpush3.bf16.msra.mxu0 %v1291_v8  ;;  %1173 = vmatpush3.bf16.msra.mxu1 %v1292_v9  ;;  %v1310_v48 = vld [vmem:[#allocation7 + $0xb8] sm:$0xff]   ;;  %v1312_v50 = vld [vmem:[#allocation7 + $0x30] sm:$0xff]   ;;  %v1315_v53 = vld [vmem:[#allocation7 + $0x28] sm:$0xff]  }
  0x62   : > { %1112 = vmatprep.subr.bf16.mxu0 %v1293_v10  ;;  %1174 = vmatprep.subr.bf16.mxu1 %v1489_v0  ;;  %v311_v38 = vsel %vm310_vm2, %v308_v32, %v309_v33  ;;  %v312_v39 = vsel %vm310_vm2, %v309_v33, %v308_v32  ;;  %v322_v41 = vsel %vm321_vm3, %v319_v34, %v320_v35  ;;  %v1313_v51 = vld [vmem:[#allocation7 + $0xb0] sm:$0xff]   ;;  %v1316_v54 = vld [vmem:[#allocation7 + $0xa8] sm:$0xff]   ;;  %v1317_v55 = vld [vmem:[#allocation7 + $0x60] sm:$0xff]   ;;  %p1422_p9 = pnand %p1421_p7, %p1415_p2 }
  0x63   : > { %v323_v42 = vsel %vm321_vm3, %v320_v35, %v319_v34  ;;  %564 = vmatprep.mubr.bf16.mxu0 %v331_v37  ;;  %v1063_v45 = vpack.c.bf16 %v311_v38, %v312_v39  ;;  %v1318_v56 = vld [vmem:[#allocation7 + $0x20] sm:$0xff]   ;;  %v1320_v58 = vld [vmem:[#allocation7 + $0x58] sm:$0xff]   ;;  %v1323_v61 = vld [vmem:[#allocation7 + $0x50] sm:$0xff]  }
  0x64   : > { %v1066_v47 = vpack.c.bf16 %v323_v42, %v322_v41  ;;  %v1319_v57 = vld [vmem:[#allocation7 + $0xa0] sm:$0xff]   ;;  %v1321_v59 = vld [vmem:[#allocation7 + $0x18] sm:$0xff]   ;;  %v1324_v62 = vld [vmem:[#allocation7 + $0x10] sm:$0xff]  }
  0x65   : > { %1113 = vmatpush3.bf16.msra.mxu0 %v1294_v11  ;;  %1175 = vmatpush3.bf16.msra.mxu1 %v1295_v13  ;;  %v1322_v60 = vld [vmem:[#allocation7 + $0x98] sm:$0xff]   ;;  %v1325_v63 = vld [vmem:[#allocation7 + $0x90] sm:$0xff]   ;;  %v1326_v1 = vld [vmem:[#allocation7 + $0x48] sm:$0xff]  }
  0x66   : > { %1114 = vmatprep.subr.bf16.mxu0 %v1296_v14  ;;  %1176 = vmatprep.subr.bf16.mxu1 %v1489_v0  ;;  %v1327_v2 = vld [vmem:[#allocation7 + $0x8] sm:$0xff]   ;;  %v1329_v4 = vld [vmem:[#allocation7 + $0x40] sm:$0xff]  }
  0x67   : > { %v1328_v3 = vld [vmem:[#allocation7 + $0x88] sm:$0xff]   ;;  %v1330_v5 = vld [vmem:[#allocation7] sm:$0xff]  }
  0x68   : > { %v1331_v6 = vld [vmem:[#allocation7 + $0x80] sm:$0xff]  }
  0x69   : > { %1115 = vmatpush3.bf16.msra.mxu0 %v1297_v15  ;;  %1177 = vmatpush3.bf16.msra.mxu1 %v1298_v17  ;;  %v1037_v9 = vld [vmem:[%s1805_s2] ss:$0 sm:$0xff] }
  0x6a   : > { %1116 = vmatprep.subr.bf16.mxu0 %v1299_v18  ;;  %1178 = vmatprep.subr.bf16.mxu1 %v1489_v0  ;;  %v1068_v39 = vld [vmem:[%s1807_s4] ss:$0 sm:$0xff] }
  0x6d   : > { %1117 = vmatpush3.bf16.msra.mxu0 %v1300_v19  ;;  %1179 = vmatpush3.bf16.msra.mxu1 %v1301_v21 }
  0x6e   : > { %1118 = vmatprep.subr.bf16.mxu0 %v1302_v22  ;;  %1180 = vmatprep.subr.bf16.mxu1 %v1489_v0 }
  0x71   : > { %1119 = vmatpush3.bf16.msra.mxu0 %v1303_v24  ;;  %1181 = vmatpush3.bf16.msra.mxu1 %v1304_v26 }
  0x72   : > { %1120 = vmatprep.subr.bf16.mxu0 %v1305_v27  ;;  %1182 = vmatprep.subr.bf16.mxu1 %v1489_v0 }
  0x75   : > { %1121 = vmatpush3.bf16.msra.mxu0 %v1306_v31  ;;  %1183 = vmatpush3.bf16.msra.mxu1 %v1307_v36 }
  0x76   : > { %1137 = vmatprep.subr.bf16.mxu0 %v1308_v43  ;;  %1188 = vmatprep.subr.bf16.mxu1 %v1489_v0 }
  0x78   : > { %1064 = vmatmul.mubr.msk.bf16.vlgmr.msra.gmra.mxu0 %vm1705_vm6, %v1063_v45  ;;  %1185 = vmatmul.mubr.msk.bf16.vlgmr.msra.gmra.mxu1 %vm1714_vm7, %v1066_v47 }
  0x79   : > { %1138 = vmatpush3.bf16.msra.mxu0 %v1309_v46  ;;  %1189 = vmatpush3.bf16.msra.mxu1 %v1310_v48 }
  0x7a   : > { %1139 = vmatprep.subr.bf16.mxu0 %v1311_v49  ;;  %1190 = vmatprep.subr.bf16.mxu1 %v1489_v0 }
  0x7b   : > { %1204 = vmatprep.mubr.msk.bf16.mxu1 %vm1490_vm0, %v1489_v0 }
  0x7d   : > { %1140 = vmatpush3.bf16.msra.mxu0 %v1312_v50  ;;  %1191 = vmatpush3.bf16.msra.mxu1 %v1313_v51 }
  0x7e   : > { %1141 = vmatprep.subr.bf16.mxu0 %v1314_v52  ;;  %1192 = vmatprep.subr.bf16.mxu1 %v1489_v0 }
  0x81   : > { %1142 = vmatpush3.bf16.msra.mxu0 %v1315_v53  ;;  %1193 = vmatpush3.bf16.msra.mxu1 %v1316_v54 }
  0x82   : > { %1194 = vmatprep.subr.bf16.mxu1 %v1489_v0  ;;  %1143 = vmatprep.subr.bf16.mxu0 %v1317_v55 }
  0x85   : > { %1144 = vmatpush3.bf16.msra.mxu0 %v1318_v56  ;;  %1195 = vmatpush3.bf16.msra.mxu1 %v1319_v57 }
  0x86   : > { %1196 = vmatprep.subr.bf16.mxu1 %v1489_v0  ;;  %1145 = vmatprep.subr.bf16.mxu0 %v1320_v58 }
  0x89   : > { %1146 = vmatpush3.bf16.msra.mxu0 %v1321_v59  ;;  %1197 = vmatpush3.bf16.msra.mxu1 %v1322_v60 }
  0x8a   : > { %1198 = vmatprep.subr.bf16.mxu1 %v1489_v0  ;;  %1147 = vmatprep.subr.bf16.mxu0 %v1323_v61 }
  0x8d   : > { %1148 = vmatpush3.bf16.msra.mxu0 %v1324_v62  ;;  %1199 = vmatpush3.bf16.msra.mxu1 %v1325_v63 }
  0x8e   : > { %1200 = vmatprep.subr.bf16.mxu1 %v1489_v0  ;;  %1149 = vmatprep.subr.bf16.mxu0 %v1326_v1 }
  0x91   : > { %1150 = vmatpush3.bf16.msra.mxu0 %v1327_v2  ;;  %1201 = vmatpush3.bf16.msra.mxu1 %v1328_v3 }
  0x92   : > { %1202 = vmatprep.subr.bf16.mxu1 %v1489_v0  ;;  %1151 = vmatprep.subr.bf16.mxu0 %v1329_v4 }
  0x95   : > { %1152 = vmatpush3.bf16.msra.mxu0 %v1330_v5  ;;  %1203 = vmatpush3.bf16.msra.mxu1 %v1331_v6 }
 0x138   : > { %v1122_v7 = vpop.f32.mrf.mxu0  ;;  %v607_v8 = vpop.f32.mrf.mxu1 }
 0x13a   : > { %v1123_v10 = vpop.f32.mrf.mxu0  ;;  %v1186_v12 = vpop.f32.mrf.mxu1 }
 0x13b   : > { %v1124_v11 = vadd.f32 %v1123_v10, %v1122_v7 }
 0x13c   : > { %v1125_v13 = vpop.f32.mrf.mxu0  ;;  %v610_v15 = vpop.f32.mrf.mxu1 }
 0x13d   : > { %v567_v14 = vadd.f32 %v1124_v11, %v1037_v9 }
 0x13e   : > { %v1126_v17 = vpop.f32.mrf.mxu0  ;;  %v1187_v19 = vpop.f32.mrf.mxu1 }
 0x13f   : > { %v608_v18 = vadd.f32 %v607_v8, %v567_v14  ;;  %v1127_v0 = vadd.f32 %v1126_v17, %v1125_v13 }
 0x141   : > { %v570_v20 = vadd.f32 %v1127_v0, %v1037_v9  ;;  %v614_v21 = vmax.f32 %v608_v18, 0.0 }
 0x143   : > { %v611_v22 = vadd.f32 %v610_v15, %v570_v20  ;;  %v616_v24 = vrot.slane %v614_v21, 7  ;;  %v622_v25 = vrot.slane %v614_v21, 1 }
 0x145   : > { %v615_v23 = vmax.f32 %v611_v22, 0.0 }
 0x147   : > { %v617_v26 = vrot.slane %v615_v23, 7  ;;  %v623_v27 = vrot.slane %v615_v23, 1  ;;  %v629_v30 = vpack.c.bf16 %v615_v23, %v614_v21 }
 0x149   : > { %862 = vmatprep.mubr.bf16.mxu0 %v629_v30  ;;  %v618_v31 = vsel %vm310_vm2, %v616_v24, %v617_v26  ;;  %v619_v32 = vsel %vm310_vm2, %v617_v26, %v616_v24  ;;  %v624_v33 = vsel %vm321_vm3, %v622_v25, %v623_v27  ;;  %v625_v34 = vsel %vm321_vm3, %v623_v27, %v622_v25 }
 0x14a   : > { %v1094_v35 = vpack.c.bf16 %v618_v31, %v619_v32  ;;  %v1097_v36 = vpack.c.bf16 %v625_v34, %v624_v33 }
 0x14c   : > { %1095 = vmatmul.mubr.msk.bf16.vlgmr.msra.gmra.mxu0 %vm1705_vm6, %v1094_v35  ;;  %1205 = vmatmul.mubr.msk.bf16.vlgmr.msra.gmra.mxu1 %vm1714_vm7, %v1097_v36 }
 0x20c   : > { %v1153_v37 = vpop.f32.mrf.mxu0  ;;  %v905_v38 = vpop.f32.mrf.mxu1 }
 0x20e   : > { %v1154_v41 = vpop.f32.mrf.mxu0  ;;  %v1206_v42 = vpop.f32.mrf.mxu1 }
 0x20f   : > { %v1155_v16 = vadd.f32 %v1154_v41, %v1153_v37 }
 0x210   : > { %v1156_v43 = vpop.f32.mrf.mxu0  ;;  %v908_v45 = vpop.f32.mrf.mxu1 }
 0x211   : > { %v865_v46 = vadd.f32 %v1155_v16, %v1068_v39 }
 0x212   : > { %v1157_v47 = vpop.f32.mrf.mxu0  ;;  %v1207_v40 = vpop.f32.mrf.mxu1 }
 0x213   : > { %v906_v48 = vadd.f32 %v905_v38, %v865_v46  ;;  %v1158_v44 = vadd.f32 %v1157_v47, %v1156_v43 }
 0x215   : > { %v912_v49 = vadd.f32 %v906_v48, %v1681_v28  ;;  %v868_v50 = vadd.f32 %v1158_v44, %v1068_v39 }
 0x217   : > { %v914_v51 = vmax.f32 %v912_v49, 0.0  ;;  %v909_v52 = vadd.f32 %v908_v45, %v868_v50 }
 0x219   : > { %916 = vst [vmem:[%s271_s12] sm:$0xff] %v914_v51  ;;  %v913_v53 = vadd.f32 %v909_v52, %v1684_v29 }
 0x21b   : > { %v915_v28 = vmax.f32 %v913_v53, 0.0 }
 0x21d   : > { %917 = vst [vmem:[%s271_s12 + $0x8] sm:$0xff] %v915_v28 }
 0x21e   : > { %1425 = shalt.err (!%p1422_p9)
}
 0x21f   : > { %s1426_s30 = scalar_lea.hbm %s1758_s9, 256  ;;  %s1430_s8 = scalar_lea.hbm %s1808_s5, 512 }
 0x220   : > { %p1427_p13 = scmp.ne.s32.totalorder %s1758_s9, %s1426_s30  ;;  %p1431_p4 = scmp.lt.s32.totalorder %s1758_s9, %s1808_s5 }
 0x221   : > { %p1432_p8 = scmp.lt.s32.totalorder %s1430_s8, %s1426_s30 }
 0x222   : > { %p1428_p5 = pnand %p1427_p13, %p1830_p10 }
 0x223   : > { %p1433_p3 = por %p1432_p8, %p1431_p4 }
 0x224   : > { %p1429_p0 = pneg %p1428_p5 }
 0x226   : > { %p1434_p11 = pnand %p1433_p3, %p1429_p0 }
 0x228   : > { %1437 = shalt.err (!%p1434_p11)
}
 0x229   : > { %s1493_s12 = smov 128   ;;  %s1494_s6 = smov 8  }
 0x22a   : > { %1218 = dma.vmem_to_hbm [thread:$0]  (%p1830_p10), %s1760_s28, 256, %s1758_s9, %s919_s13, %s1493_s12, %s1493_s12, %s1494_s6  }
 0x22b PF: > { %s947_s7 = sand.u32 1, %s1468_s18   ;;  %p1831_p1 = scmp.ne.s32.totalorder %s1814_s25, 0 }
 0x22c   : > { %p1832_p2 = scmp.ge.s32.totalorder %s1480_s21, 2  ;;  %s948_s22 = scalar_lea.sflag [#allocation4], %s947_s7 }
 0x22e   : > { %p1232_p6 = pnand %p1832_p2, %p1831_p1 }
 0x230   : > { %p1233_p12 = pneg %p1232_p6 }
 0x232   : > { %1463 = dma.done.wait (%p1233_p12), %s948_s22, 256  }
 0x233   : > { %1465 = vsyncadd (%p1233_p12), %s948_s22, 4294967040  ;;  %p19_p7 = scmp.ge.s32.totalorder %s1597_s15, 4   ;;  %s1833_s18 = smov %s1472_s19 }
 0x234   : > { %s1834_s19 = smov %s1476_s20  ;;  %s1835_s20 = smov %s1613_s27 }
 0x235   : > { %s1836_s21 = smov %s1597_s15  ;;  %21 = sbr.rel (!%p19_p7) target bundleno = 6 (0x6), region = 93 }
 0x23a   :  { %953 = vsyncpa [#allocation3], 1 }
 0x23b   :  { %955 = vsyncpa [#allocation3 + $0x1], 1 }
 0x23c   :  { %956 = vsyncpa [#allocation6], 1 }
 0x23d   :  { %957 = vsyncpa [#allocation4], 1 }
 0x23e   :  { %959 = vsyncpa [#allocation4 + $0x1], 1 }

// kernel: tpu_custom_call.1
= control target key start
LH: loop header
LB: loop body
LE: loop exit
PB: predicated region body
PF: predicated region fallthrough
CT: control target
= control target key end

     0   :  { %10 = vsyncpa [#allocation3], 0  ;;  %s1803_s0 = inlined_call_operand.hbm [shape: f32[32,128], index: 0, kind: input, shape index: {}]   ;;  %s1804_s1 = inlined_call_operand.hbm [shape: bf16[384,128], index: 1, kind: input, shape index: {}]   ;;  %s1805_s2 = inlined_call_operand.vmem [shape: f32[1,128], index: 2, kind: input, shape index: {}]   ;;  %s1806_s3 = inlined_call_operand.hbm [shape: bf16[384,128], index: 3, kind: input, shape index: {}]   ;;  %s1807_s4 = inlined_call_operand.vmem [shape: f32[1,128], index: 4, kind: input, shape index: {}]   ;;  %s1808_s5 = inlined_call_operand.hbm [shape: f32[32,128], index: 5, kind: output, shape index: {}]  }
   0x1   :  { %12 = vsyncpa [#allocation3 + $0x1], 0 }
   0x2   :  { %13 = vsyncpa [#allocation6], 0 }
   0x3   :  { %14 = vsyncpa [#allocation4], 0 }
   0x4   :  { %16 = vsyncpa [#allocation4 + $0x1], 0  ;;  %s1525_s18 = smov 0   ;;  %s1527_s19 = smov 0  }
   0x5   :  { %s1529_s20 = smov 0   ;;  %s1531_s21 = smov 0  }
   0x6 LB: > { %s1546_s22 = sadd.s32 4294967295, %s1480_s21   ;;  %s1024_s23 = sadd.s32 4294967294, %s1480_s21   ;;  %s1480_s21 = sphi %s1531_s21, %s1836_s21   ;;  %s1476_s20 = sphi %s1529_s20, %s1835_s20   ;;  %s1472_s19 = sphi %s1527_s19, %s1834_s19   ;;  %s1468_s18 = sphi %s1525_s18, %s1833_s18  }
   0x7   : > { %p42_p0 = scmp.ne.s32.totalorder %s1472_s19, %s1468_s18  ;;  %p1809_p1 = scmp.eq.s32.totalorder %s1546_s22, 0 }
   0x8   : > { %p156_p3 = scmp.eq.s32.totalorder %s1024_s23, 1  ;;  %p1025_p5 = scmp.ge.s32.totalorder %s1480_s21, 1 }
   0x9   : > { %p1555_p4 = por %p1809_p1, %p42_p0  ;;  %p163_p7 = scmp.lt.s32.totalorder %s1480_s21, 3 }
   0xa   : > { %p1560_p6 = por %p156_p3, %p42_p0  ;;  %s1482_s27 = smov [#allocation5]  }
   0xb   : > { %s1813_s24 = scalar_select %p1555_p4, 1, 0 }
   0xc   : > { %s1814_s25 = scalar_select %p1560_p6, 1, 0 }
   0xd   : > { %p1565_p8 = pnand %p1025_p5, %p163_p7  ;;  %s175_s28 = sshll.u32 %s1482_s27, 4  ;;  %s176_s28 = int_to_ptr.vmem [resolvable:$true] %s175_s28 }
   0xe   : > { %s1483_s30 = smov [#allocation7]   ;;  %s1343_s7 = scalar_lea.vmem %s176_s28, 3072 }
   0xf   : > { %s1815_s26 = scalar_select %p1565_p8, 1, 0 }
  0x10   : > { %p1220_p9 = pneg %p1565_p8  ;;  %s191_s6 = sshll.u32 %s1483_s30, 4  ;;  %s192_s6 = int_to_ptr.vmem [resolvable:$true] %s191_s6 }
  0x11   : > { %p1344_p13 = scmp.ne.s32.totalorder %s176_s28, %s1343_s7  ;;  %p1351_p5 = scmp.lt.s32.totalorder %s176_s28, %s176_s28 }
  0x12   : > { %p1574_p11 = pnand %p1220_p9, %p1809_p1  ;;  %p1352_p7 = scmp.lt.s32.totalorder %s1343_s7, %s1343_s7 }
  0x14   : > { %p1334_p12 = pneg %p1574_p11  ;;  %p1353_p10 = por %p1352_p7, %p1351_p5 }
  0x16   : > { %p1346_p0 = pnand %p1344_p13, %p1334_p12 }
  0x18   : > { %p1347_p3 = pneg %p1346_p0 }
  0x1a   : > { %p1354_p9 = pnand %p1353_p10, %p1347_p3 }
  0x1c   : > { %1357 = shalt.err (!%p1354_p9)
}
  0x1d   : > { %s1484_s8 = smov 64   ;;  %s1485_s9 = smov 4  }
  0x1e   : > { %1223 = dma.hbm_to_vmem [thread:$0]  (!%p1574_p11), %s1804_s1, 3072, %s176_s28, [#allocation6], %s1484_s8, %s1484_s8, %s1485_s9  }
  0x1f   : > { %s1369_s12 = scalar_lea.vmem %s192_s6, 3072  ;;  %p1377_p2 = scmp.lt.s32.totalorder %s192_s6, %s192_s6 }
  0x20   : > { %p1370_p1 = scmp.ne.s32.totalorder %s192_s6, %s1369_s12  ;;  %p1378_p6 = scmp.lt.s32.totalorder %s1369_s12, %s1369_s12 }
  0x22   : > { %p1372_p13 = pnand %p1370_p1, %p1334_p12  ;;  %p1379_p5 = por %p1378_p6, %p1377_p2 }
  0x24   : > { %p1373_p0 = pneg %p1372_p13 }
  0x26   : > { %p1380_p10 = pnand %p1379_p5, %p1373_p0 }
  0x28   : > { %1383 = shalt.err (!%p1380_p10)
}
  0x29   : > { %1226 = dma.hbm_to_vmem [thread:$0]  (!%p1574_p11), %s1806_s3, 3072, %s192_s6, [#allocation6], %s1484_s8, %s1484_s8, %s1485_s9  }
  0x2a   : > { %s1597_s15 = sadd.s32 1, %s1480_s21   ;;  %s29_s16 = sadd.s32 1, %s1476_s20 }
  0x2b   : > { %s26_s17 = ssub.s32 %s1480_s21, %s1597_s15  ;;  %p36_p1 = scmp.ne.s32.totalorder %s1476_s20, %s1472_s19 }
  0x2c   : > { %p27_p2 = scmp.eq.s32.totalorder %s26_s17, 0  ;;  %p37_p6 = scmp.eq.s32.totalorder %s1480_s21, 0 }
  0x2d   : > { %p1817_p12 = scmp.eq.s32.totalorder %s1546_s22, 1  ;;  %p1237_p7 = scmp.lt.s32.totalorder %s1480_s21, 2 }
  0x2e   : > { %s1613_s27 = scalar_select %p27_p2, %s1476_s20, %s29_s16  }
  0x2f   : > { %p1607_p3 = por %p1817_p12, %p36_p1  ;;  %p38_p9 = por %p37_p6, %p36_p1 }
  0x30   : > { %s208_s28 = sand.u32 1, %s1476_s20   ;;  %s1104_s30 = sshll.u32 %s1480_s21, 8 }
  0x31   : > { %s1818_s23 = scalar_select %p1607_p3, 1, 0 }
  0x32   : > { %s1029_s29 = sshll.u32 %s208_s28, 4  ;;  %s1620_s8 = scalar_lea.hbm %s1803_s0, %s1104_s30 }
  0x33   : > { %s212_s9 = scalar_lea.vmem [#allocation2], %s1029_s29  ;;  %p1624_p11 = pnand %p1237_p7, %p38_p9 }
  0x34   : > { %s219_s10 = sshll.u32 %s212_s9, 4  ;;  %s1628_s12 = scalar_lea.sflag [#allocation3], %s208_s28  ;;  %s1622_s10 = int_to_ptr.vmem [resolvable:$true] %s219_s10 }
  0x35   : > { %s1384_s13 = scalar_lea.hbm %s1620_s8, 256  ;;  %p1386_p0 = pneg %p1624_p11 }
  0x36   : > { %p1385_p13 = scmp.ne.s32.totalorder %s1620_s8, %s1384_s13  ;;  %s1389_s17 = scalar_lea.hbm %s1803_s0, 512 }
  0x37   : > { %p1390_p1 = scmp.lt.s32.totalorder %s1620_s8, %s1803_s0  ;;  %p1391_p2 = scmp.lt.s32.totalorder %s1389_s17, %s1384_s13 }
  0x38   : > { %p1387_p5 = pnand %p1386_p0, %p1385_p13 }
  0x39   : > { %p1392_p6 = por %p1391_p2, %p1390_p1 }
  0x3a   : > { %p1388_p10 = pneg %p1387_p5 }
  0x3c   : > { %p1393_p12 = pnand %p1392_p6, %p1388_p10 }
  0x3e   : > { %1396 = shalt.err (!%p1393_p12)
}
  0x3f   : > { %s1397_s28 = scalar_lea.vmem %s1622_s10, 256  ;;  %s1486_s6 = smov [#allocation2]  }
  0x40   : > { %p1398_p7 = scmp.ne.s32.totalorder %s1622_s10, %s1397_s28  ;;  %s1402_s7 = sshll.u32 %s1486_s6, 4  ;;  %s1403_s7 = int_to_ptr.vmem [resolvable:$false] %s1402_s7 }
  0x41   : > { %s1404_s9 = scalar_lea.vmem %s1403_s7, 512  ;;  %p1405_p5 = scmp.lt.s32.totalorder %s1622_s10, %s1403_s7 }
  0x42   : > { %p1400_p9 = pnand %p1398_p7, %p1386_p0  ;;  %p1406_p3 = scmp.lt.s32.totalorder %s1404_s9, %s1397_s28 }
  0x44   : > { %p1401_p13 = pneg %p1400_p9  ;;  %p1407_p4 = por %p1406_p3, %p1405_p5 }
  0x46   : > { %p1408_p8 = pnand %p1407_p4, %p1401_p13 }
  0x48   : > { %1411 = shalt.err (!%p1408_p8)
}
  0x49   : > { %s1487_s13 = smov 128   ;;  %s1488_s14 = smov 8  }
  0x4a   : > { %1230 = dma.hbm_to_vmem [thread:$0]  (!%p1624_p11), %s1620_s8, 256, %s1622_s10, %s1628_s12, %s1487_s13, %s1487_s13, %s1488_s14  }
  0x4b   : > { %p1820_p0 = scmp.ne.s32.totalorder %s1815_s26, 0 }
  0x4c   : > { %s1652_s16 = sand.u32 (!%p1820_p0), 1, %s1472_s19   ;;  %p1821_p4 = scmp.ne.s32.totalorder (!%p1820_p0), %s1813_s24, 0 }
  0x4d   : > { %231 = sbr.rel (%p1820_p0) target bundleno = 555 (0x22b), region = 40  ;;  %s1033_s17 = sshll.u32 (!%p1820_p0), %s1652_s16, 4 }
  0x4e   : > { %s234_s29 = scalar_lea.sflag (!%p1820_p0), [#allocation3], %s1652_s16  ;;  %s1658_s30 = scalar_lea.vmem (!%p1820_p0), [#allocation2], %s1033_s17 }
  0x52   : > { %1455 = dma.done.wait (%p1821_p4), %s234_s29, 256  }
  0x53   : > { %1457 = vsyncadd (%p1821_p4), %s234_s29, 4294967040  ;;  %p1822_p8 = scmp.eq.s32.totalorder %s1546_s22, 0 }
  0x55   : > { %1459 = dma.done.wait (%p1822_p8), [#allocation6], 6144   ;;  %p1823_p3 = pmov %p1822_p8 }
  0x56   : > { %v1489_v0 = vmov 0.0   ;;  %vm1490_vm0 = vmmov 0   ;;  %v1284_v1 = vld [vmem:[#allocation5 + $0x78] sm:$0xff]   ;;  %v1287_v4 = vld [vmem:[#allocation5 + $0x70] sm:$0xff]   ;;  %v1290_v7 = vld [vmem:[#allocation5 + $0x68] sm:$0xff]   ;;  %v277_v12 = vlaneseq  ;;  %vm1491_vm5 = vmmov 1  }
  0x57   : > { %1461 = vsyncadd (%p1823_p3), [#allocation6], 4294961152  ;;  %1168 = vmatprep.subr.bf16.mxu1 %v1489_v0  ;;  %1184 = vmatprep.mubr.msk.bf16.mxu1 %vm1490_vm0, %v1489_v0  ;;  %v1285_v2 = vld [vmem:[#allocation5 + $0x38] sm:$0xff]   ;;  %v1288_v5 = vld [vmem:[#allocation5 + $0x30] sm:$0xff]   ;;  %s1105_s11 = sshll.u32 %s1546_s22, 8  ;;  %s271_s12 = scalar_lea.vmem [#allocation8], %s1033_s17 }
  0x58   : > { %1106 = vmatprep.subr.bf16.mxu0 %v1284_v1  ;;  %v1286_v3 = vld [vmem:[#allocation5 + $0xb8] sm:$0xff]   ;;  %v1289_v6 = vld [vmem:[#allocation5 + $0xb0] sm:$0xff]   ;;  %v1291_v8 = vld [vmem:[#allocation5 + $0x28] sm:$0xff]   ;;  %v1674_v16 = vshrl.u32 %v277_v12, 7  ;;  %s932_s28 = sshll.u32 %s271_s12, 4  ;;  %s1758_s9 = scalar_lea.hbm %s1808_s5, %s1105_s11  ;;  %s1760_s28 = int_to_ptr.vmem [resolvable:$true] %s932_s28 }
  0x59   : > { %1107 = vmatpush3.bf16.msra.mxu0 %v1285_v2  ;;  %1169 = vmatpush3.bf16.msra.mxu1 %v1286_v3  ;;  %v1292_v9 = vld [vmem:[#allocation5 + $0xa8] sm:$0xff]   ;;  %v1293_v10 = vld [vmem:[#allocation5 + $0x60] sm:$0xff]   ;;  %v1296_v14 = vld [vmem:[#allocation5 + $0x58] sm:$0xff]   ;;  %s919_s13 = scalar_lea.sflag [#allocation4], %s1652_s16  ;;  %s1412_s22 = scalar_lea.vmem %s1760_s28, 256 }
  0x5a   : > { %1108 = vmatprep.subr.bf16.mxu0 %v1287_v4  ;;  %1170 = vmatprep.subr.bf16.mxu1 %v1489_v0  ;;  %v1294_v11 = vld [vmem:[#allocation5 + $0x20] sm:$0xff]   ;;  %v1297_v15 = vld [vmem:[#allocation5 + $0x18] sm:$0xff]   ;;  %v1299_v18 = vld [vmem:[#allocation5 + $0x50] sm:$0xff]   ;;  %v279_v20 = vadd.s32 8, %v1674_v16  ;;  %v284_v23 = vand.u32 15, %v1674_v16  ;;  %vm310_vm2 = vcmp.lt.s32.totalorder %v1674_v16, 1  ;;  %p1413_p11 = scmp.ne.s32.totalorder %s1760_s28, %s1412_s22 }
  0x5b   : > { %v1295_v13 = vld [vmem:[#allocation5 + $0xa0] sm:$0xff]   ;;  %v1298_v17 = vld [vmem:[#allocation5 + $0x98] sm:$0xff]   ;;  %v1300_v19 = vld [vmem:[#allocation5 + $0x10] sm:$0xff]   ;;  %vm321_vm3 = vcmp.lt.s32.totalorder %v1674_v16, 7  ;;  %p1830_p10 = scmp.ne.s32.totalorder %s1818_s23, 0  ;;  %s1492_s14 = smov [#allocation8]  }
  0x5c   : > { %v1301_v21 = vld [vmem:[#allocation5 + $0x90] sm:$0xff]   ;;  %v1302_v22 = vld [vmem:[#allocation5 + $0x48] sm:$0xff]   ;;  %v291_v25 = vand.u32 15, %v279_v20  ;;  %v1305_v27 = vld [vmem:[#allocation5 + $0x40] sm:$0xff]   ;;  %vm1686_vm1 = vcmp.ne.s32.totalorder %v284_v23, 0  ;;  %s1416_s17 = sshll.u32 %s1492_s14, 4  ;;  %s1417_s17 = int_to_ptr.vmem [resolvable:$false] %s1416_s17 }
  0x5d   : > { %1109 = vmatpush3.bf16.msra.mxu0 %v1288_v5  ;;  %1171 = vmatpush3.bf16.msra.mxu1 %v1289_v6  ;;  %v1303_v24 = vld [vmem:[#allocation5 + $0x8] sm:$0xff]   ;;  %v1681_v28 = vld [vmem:[%s1658_s30] sm:$0xff]  ;;  %vm1705_vm6 = vmpackc.low %vm1491_vm5, %vm1686_vm1  ;;  %p1414_p1 = pnand %p1413_p11, %p1830_p10  ;;  %s1418_s29 = scalar_lea.vmem %s1417_s17, 512 }
  0x5e   : > { %1110 = vmatprep.subr.bf16.mxu0 %v1290_v7  ;;  %1172 = vmatprep.subr.bf16.mxu1 %v1489_v0  ;;  %v1304_v26 = vld [vmem:[#allocation5 + $0x88] sm:$0xff]   ;;  %v1306_v31 = vld [vmem:[#allocation5] sm:$0xff]   ;;  %v308_v32 = vrot.slane %v1681_v28, 7  ;;  %v319_v34 = vrot.slane %v1681_v28, 1  ;;  %vm307_vm4 = vcmp.ne.s32.totalorder %v291_v25, 15  ;;  %v1308_v43 = vld [vmem:[#allocation7 + $0x78] sm:$0xff]   ;;  %p1419_p6 = scmp.lt.s32.totalorder %s1760_s28, %s1417_s17  ;;  %p1420_p12 = scmp.lt.s32.totalorder %s1418_s29, %s1412_s22 }
  0x5f   : > { %v1684_v29 = vld [vmem:[%s1658_s30 + $0x8] sm:$0xff]  ;;  %v1307_v36 = vld [vmem:[#allocation5 + $0x80] sm:$0xff]   ;;  %vm1714_vm7 = vmpackc.low %vm307_vm4, %vm1491_vm5  ;;  %p1415_p2 = pneg %p1414_p1 }
  0x60   : > { %v309_v33 = vrot.slane %v1684_v29, 7  ;;  %v320_v35 = vrot.slane %v1684_v29, 1  ;;  %v331_v37 = vpack.c.bf16 %v1684_v29, %v1681_v28  ;;  %v1309_v46 = vld [vmem:[#allocation7 + $0x38] sm:$0xff]   ;;  %v1311_v49 = vld [vmem:[#allocation7 + $0x70] sm:$0xff]   ;;  %v1314_v52 = vld [vmem:[#allocation7 + $0x68] sm:$0xff]   ;;  %p1421_p7 = por %p1420_p12, %p1419_p6 }
  0x61   : > { %1111 = vmatpush3.bf16.msra.mxu0 %v1291_v8  ;;  %1173 = vmatpush3.bf16.msra.mxu1 %v1292_v9  ;;  %v1310_v48 = vld [vmem:[#allocation7 + $0xb8] sm:$0xff]   ;;  %v1312_v50 = vld [vmem:[#allocation7 + $0x30] sm:$0xff]   ;;  %v1315_v53 = vld [vmem:[#allocation7 + $0x28] sm:$0xff]  }
  0x62   : > { %1112 = vmatprep.subr.bf16.mxu0 %v1293_v10  ;;  %1174 = vmatprep.subr.bf16.mxu1 %v1489_v0  ;;  %v311_v38 = vsel %vm310_vm2, %v308_v32, %v309_v33  ;;  %v312_v39 = vsel %vm310_vm2, %v309_v33, %v308_v32  ;;  %v322_v41 = vsel %vm321_vm3, %v319_v34, %v320_v35  ;;  %v1313_v51 = vld [vmem:[#allocation7 + $0xb0] sm:$0xff]   ;;  %v1316_v54 = vld [vmem:[#allocation7 + $0xa8] sm:$0xff]   ;;  %v1317_v55 = vld [vmem:[#allocation7 + $0x60] sm:$0xff]   ;;  %p1422_p9 = pnand %p1421_p7, %p1415_p2 }
  0x63   : > { %v323_v42 = vsel %vm321_vm3, %v320_v35, %v319_v34  ;;  %564 = vmatprep.mubr.bf16.mxu0 %v331_v37  ;;  %v1063_v45 = vpack.c.bf16 %v311_v38, %v312_v39  ;;  %v1318_v56 = vld [vmem:[#allocation7 + $0x20] sm:$0xff]   ;;  %v1320_v58 = vld [vmem:[#allocation7 + $0x58] sm:$0xff]   ;;  %v1323_v61 = vld [vmem:[#allocation7 + $0x50] sm:$0xff]  }
  0x64   : > { %v1066_v47 = vpack.c.bf16 %v323_v42, %v322_v41  ;;  %v1319_v57 = vld [vmem:[#allocation7 + $0xa0] sm:$0xff]   ;;  %v1321_v59 = vld [vmem:[#allocation7 + $0x18] sm:$0xff]   ;;  %v1324_v62 = vld [vmem:[#allocation7 + $0x10] sm:$0xff]  }
  0x65   : > { %1113 = vmatpush3.bf16.msra.mxu0 %v1294_v11  ;;  %1175 = vmatpush3.bf16.msra.mxu1 %v1295_v13  ;;  %v1322_v60 = vld [vmem:[#allocation7 + $0x98] sm:$0xff]   ;;  %v1325_v63 = vld [vmem:[#allocation7 + $0x90] sm:$0xff]   ;;  %v1326_v1 = vld [vmem:[#allocation7 + $0x48] sm:$0xff]  }
  0x66   : > { %1114 = vmatprep.subr.bf16.mxu0 %v1296_v14  ;;  %1176 = vmatprep.subr.bf16.mxu1 %v1489_v0  ;;  %v1327_v2 = vld [vmem:[#allocation7 + $0x8] sm:$0xff]   ;;  %v1329_v4 = vld [vmem:[#allocation7 + $0x40] sm:$0xff]  }
  0x67   : > { %v1328_v3 = vld [vmem:[#allocation7 + $0x88] sm:$0xff]   ;;  %v1330_v5 = vld [vmem:[#allocation7] sm:$0xff]  }
  0x68   : > { %v1331_v6 = vld [vmem:[#allocation7 + $0x80] sm:$0xff]  }
  0x69   : > { %1115 = vmatpush3.bf16.msra.mxu0 %v1297_v15  ;;  %1177 = vmatpush3.bf16.msra.mxu1 %v1298_v17  ;;  %v1037_v9 = vld [vmem:[%s1805_s2] ss:$0 sm:$0xff] }
  0x6a   : > { %1116 = vmatprep.subr.bf16.mxu0 %v1299_v18  ;;  %1178 = vmatprep.subr.bf16.mxu1 %v1489_v0  ;;  %v1068_v39 = vld [vmem:[%s1807_s4] ss:$0 sm:$0xff] }
  0x6d   : > { %1117 = vmatpush3.bf16.msra.mxu0 %v1300_v19  ;;  %1179 = vmatpush3.bf16.msra.mxu1 %v1301_v21 }
  0x6e   : > { %1118 = vmatprep.subr.bf16.mxu0 %v1302_v22  ;;  %1180 = vmatprep.subr.bf16.mxu1 %v1489_v0 }
  0x71   : > { %1119 = vmatpush3.bf16.msra.mxu0 %v1303_v24  ;;  %1181 = vmatpush3.bf16.msra.mxu1 %v1304_v26 }
  0x72   : > { %1120 = vmatprep.subr.bf16.mxu0 %v1305_v27  ;;  %1182 = vmatprep.subr.bf16.mxu1 %v1489_v0 }
  0x75   : > { %1121 = vmatpush3.bf16.msra.mxu0 %v1306_v31  ;;  %1183 = vmatpush3.bf16.msra.mxu1 %v1307_v36 }
  0x76   : > { %1137 = vmatprep.subr.bf16.mxu0 %v1308_v43  ;;  %1188 = vmatprep.subr.bf16.mxu1 %v1489_v0 }
  0x78   : > { %1064 = vmatmul.mubr.msk.bf16.vlgmr.msra.gmra.mxu0 %vm1705_vm6, %v1063_v45  ;;  %1185 = vmatmul.mubr.msk.bf16.vlgmr.msra.gmra.mxu1 %vm1714_vm7, %v1066_v47 }
  0x79   : > { %1138 = vmatpush3.bf16.msra.mxu0 %v1309_v46  ;;  %1189 = vmatpush3.bf16.msra.mxu1 %v1310_v48 }
  0x7a   : > { %1139 = vmatprep.subr.bf16.mxu0 %v1311_v49  ;;  %1190 = vmatprep.subr.bf16.mxu1 %v1489_v0 }
  0x7b   : > { %1204 = vmatprep.mubr.msk.bf16.mxu1 %vm1490_vm0, %v1489_v0 }
  0x7d   : > { %1140 = vmatpush3.bf16.msra.mxu0 %v1312_v50  ;;  %1191 = vmatpush3.bf16.msra.mxu1 %v1313_v51 }
  0x7e   : > { %1141 = vmatprep.subr.bf16.mxu0 %v1314_v52  ;;  %1192 = vmatprep.subr.bf16.mxu1 %v1489_v0 }
  0x81   : > { %1142 = vmatpush3.bf16.msra.mxu0 %v1315_v53  ;;  %1193 = vmatpush3.bf16.msra.mxu1 %v1316_v54 }
  0x82   : > { %1194 = vmatprep.subr.bf16.mxu1 %v1489_v0  ;;  %1143 = vmatprep.subr.bf16.mxu0 %v1317_v55 }
  0x85   : > { %1144 = vmatpush3.bf16.msra.mxu0 %v1318_v56  ;;  %1195 = vmatpush3.bf16.msra.mxu1 %v1319_v57 }
  0x86   : > { %1196 = vmatprep.subr.bf16.mxu1 %v1489_v0  ;;  %1145 = vmatprep.subr.bf16.mxu0 %v1320_v58 }
  0x89   : > { %1146 = vmatpush3.bf16.msra.mxu0 %v1321_v59  ;;  %1197 = vmatpush3.bf16.msra.mxu1 %v1322_v60 }
  0x8a   : > { %1198 = vmatprep.subr.bf16.mxu1 %v1489_v0  ;;  %1147 = vmatprep.subr.bf16.mxu0 %v1323_v61 }
  0x8d   : > { %1148 = vmatpush3.bf16.msra.mxu0 %v1324_v62  ;;  %1199 = vmatpush3.bf16.msra.mxu1 %v1325_v63 }
  0x8e   : > { %1200 = vmatprep.subr.bf16.mxu1 %v1489_v0  ;;  %1149 = vmatprep.subr.bf16.mxu0 %v1326_v1 }
  0x91   : > { %1150 = vmatpush3.bf16.msra.mxu0 %v1327_v2  ;;  %1201 = vmatpush3.bf16.msra.mxu1 %v1328_v3 }
  0x92   : > { %1202 = vmatprep.subr.bf16.mxu1 %v1489_v0  ;;  %1151 = vmatprep.subr.bf16.mxu0 %v1329_v4 }
  0x95   : > { %1152 = vmatpush3.bf16.msra.mxu0 %v1330_v5  ;;  %1203 = vmatpush3.bf16.msra.mxu1 %v1331_v6 }
 0x138   : > { %v1122_v7 = vpop.f32.mrf.mxu0  ;;  %v607_v8 = vpop.f32.mrf.mxu1 }
 0x13a   : > { %v1123_v10 = vpop.f32.mrf.mxu0  ;;  %v1186_v12 = vpop.f32.mrf.mxu1 }
 0x13b   : > { %v1124_v11 = vadd.f32 %v1123_v10, %v1122_v7 }
 0x13c   : > { %v1125_v13 = vpop.f32.mrf.mxu0  ;;  %v610_v15 = vpop.f32.mrf.mxu1 }
 0x13d   : > { %v567_v14 = vadd.f32 %v1124_v11, %v1037_v9 }
 0x13e   : > { %v1126_v17 = vpop.f32.mrf.mxu0  ;;  %v1187_v19 = vpop.f32.mrf.mxu1 }
 0x13f   : > { %v608_v18 = vadd.f32 %v607_v8, %v567_v14  ;;  %v1127_v0 = vadd.f32 %v1126_v17, %v1125_v13 }
 0x141   : > { %v570_v20 = vadd.f32 %v1127_v0, %v1037_v9  ;;  %v614_v21 = vmax.f32 %v608_v18, 0.0 }
 0x143   : > { %v611_v22 = vadd.f32 %v610_v15, %v570_v20  ;;  %v616_v24 = vrot.slane %v614_v21, 7  ;;  %v622_v25 = vrot.slane %v614_v21, 1 }
 0x145   : > { %v615_v23 = vmax.f32 %v611_v22, 0.0 }
 0x147   : > { %v617_v26 = vrot.slane %v615_v23, 7  ;;  %v623_v27 = vrot.slane %v615_v23, 1  ;;  %v629_v30 = vpack.c.bf16 %v615_v23, %v614_v21 }
 0x149   : > { %862 = vmatprep.mubr.bf16.mxu0 %v629_v30  ;;  %v618_v31 = vsel %vm310_vm2, %v616_v24, %v617_v26  ;;  %v619_v32 = vsel %vm310_vm2, %v617_v26, %v616_v24  ;;  %v624_v33 = vsel %vm321_vm3, %v622_v25, %v623_v27  ;;  %v625_v34 = vsel %vm321_vm3, %v623_v27, %v622_v25 }
 0x14a   : > { %v1094_v35 = vpack.c.bf16 %v618_v31, %v619_v32  ;;  %v1097_v36 = vpack.c.bf16 %v625_v34, %v624_v33 }
 0x14c   : > { %1095 = vmatmul.mubr.msk.bf16.vlgmr.msra.gmra.mxu0 %vm1705_vm6, %v1094_v35  ;;  %1205 = vmatmul.mubr.msk.bf16.vlgmr.msra.gmra.mxu1 %vm1714_vm7, %v1097_v36 }
 0x20c   : > { %v1153_v37 = vpop.f32.mrf.mxu0  ;;  %v905_v38 = vpop.f32.mrf.mxu1 }
 0x20e   : > { %v1154_v41 = vpop.f32.mrf.mxu0  ;;  %v1206_v42 = vpop.f32.mrf.mxu1 }
 0x20f   : > { %v1155_v16 = vadd.f32 %v1154_v41, %v1153_v37 }
 0x210   : > { %v1156_v43 = vpop.f32.mrf.mxu0  ;;  %v908_v45 = vpop.f32.mrf.mxu1 }
 0x211   : > { %v865_v46 = vadd.f32 %v1155_v16, %v1068_v39 }
 0x212   : > { %v1157_v47 = vpop.f32.mrf.mxu0  ;;  %v1207_v40 = vpop.f32.mrf.mxu1 }
 0x213   : > { %v906_v48 = vadd.f32 %v905_v38, %v865_v46  ;;  %v1158_v44 = vadd.f32 %v1157_v47, %v1156_v43 }
 0x215   : > { %v912_v49 = vadd.f32 %v906_v48, %v1681_v28  ;;  %v868_v50 = vadd.f32 %v1158_v44, %v1068_v39 }
 0x217   : > { %v914_v51 = vmax.f32 %v912_v49, 0.0  ;;  %v909_v52 = vadd.f32 %v908_v45, %v868_v50 }
 0x219   : > { %916 = vst [vmem:[%s271_s12] sm:$0xff] %v914_v51  ;;  %v913_v53 = vadd.f32 %v909_v52, %v1684_v29 }
 0x21b   : > { %v915_v28 = vmax.f32 %v913_v53, 0.0 }
 0x21d   : > { %917 = vst [vmem:[%s271_s12 + $0x8] sm:$0xff] %v915_v28 }
 0x21e   : > { %1425 = shalt.err (!%p1422_p9)
}
 0x21f   : > { %s1426_s30 = scalar_lea.hbm %s1758_s9, 256  ;;  %s1430_s8 = scalar_lea.hbm %s1808_s5, 512 }
 0x220   : > { %p1427_p13 = scmp.ne.s32.totalorder %s1758_s9, %s1426_s30  ;;  %p1431_p4 = scmp.lt.s32.totalorder %s1758_s9, %s1808_s5 }
 0x221   : > { %p1432_p8 = scmp.lt.s32.totalorder %s1430_s8, %s1426_s30 }
 0x222   : > { %p1428_p5 = pnand %p1427_p13, %p1830_p10 }
 0x223   : > { %p1433_p3 = por %p1432_p8, %p1431_p4 }
 0x224   : > { %p1429_p0 = pneg %p1428_p5 }
 0x226   : > { %p1434_p11 = pnand %p1433_p3, %p1429_p0 }
 0x228   : > { %1437 = shalt.err (!%p1434_p11)
}
 0x229   : > { %s1493_s12 = smov 128   ;;  %s1494_s6 = smov 8  }
 0x22a   : > { %1218 = dma.vmem_to_hbm [thread:$0]  (%p1830_p10), %s1760_s28, 256, %s1758_s9, %s919_s13, %s1493_s12, %s1493_s12, %s1494_s6  }
 0x22b PF: > { %s947_s7 = sand.u32 1, %s1468_s18   ;;  %p1831_p1 = scmp.ne.s32.totalorder %s1814_s25, 0 }
 0x22c   : > { %p1832_p2 = scmp.ge.s32.totalorder %s1480_s21, 2  ;;  %s948_s22 = scalar_lea.sflag [#allocation4], %s947_s7 }
 0x22e   : > { %p1232_p6 = pnand %p1832_p2, %p1831_p1 }
 0x230   : > { %p1233_p12 = pneg %p1232_p6 }
 0x232   : > { %1463 = dma.done.wait (%p1233_p12), %s948_s22, 256  }
 0x233   : > { %1465 = vsyncadd (%p1233_p12), %s948_s22, 4294967040  ;;  %p19_p7 = scmp.ge.s32.totalorder %s1597_s15, 4   ;;  %s1833_s18 = smov %s1472_s19 }
 0x234   : > { %s1834_s19 = smov %s1476_s20  ;;  %s1835_s20 = smov %s1613_s27 }
 0x235   : > { %s1836_s21 = smov %s1597_s15  ;;  %21 = sbr.rel (!%p19_p7) target bundleno = 6 (0x6), region = 93 }
 0x23a   :  { %953 = vsyncpa [#allocation3], 1 }
 0x23b   :  { %955 = vsyncpa [#allocation3 + $0x1], 1 }
 0x23c   :  { %956 = vsyncpa [#allocation6], 1 }
 0x23d   :  { %957 = vsyncpa [#allocation4], 1 }
 0x23e   :  { %959 = vsyncpa [#allocation4 + $0x1], 1 }

</bundles_post_ra>
